<compile_context>
chip_gen: v7x
topology: tpu7x:2x2x1
jax: 0.10.0
libtpu: 0.0.40
codegen_flags: <defaults>
</compile_context>

<pallas_src>
import functools
import math

import jax
import jax.numpy as jnp
import numpy as np
from jax.experimental import pallas as pl
from jax.experimental.pallas import tpu as pltpu


def _attn_pool_kernel(xs_ref, pos0_ref, possp_ref,
                      wqkv_ref, wkv_ref, wc_ref,
                      bqkv_ref, bkv_ref, bc_ref, bd_ref,
                      out_ref, *, num_heads: int, mxu_dtype):
    f32 = jnp.float32
    TB, S, C = xs_ref.shape
    D = C // num_heads
    scale = 1.0 / math.sqrt(D)

    xs = xs_ref[...].astype(f32)                         # (TB, S, C) spatial tokens
    mean_tok = jnp.mean(xs, axis=1)                      # (TB, C)

    # ---- fused token prep (mean token + positional embedding), f32 ----
    q_tok = mean_tok + pos0_ref[...]                     # (TB, C)   token 0 (= query)
    t_sp = xs + possp_ref[...][None, :, :]               # (TB, S, C) tokens 1..S

    # ---- fused q/k/v projections: two lane-dense MXU matmuls ----
    # token 0:  q | k0 | v0
    qkv0 = jnp.dot(q_tok.astype(mxu_dtype), wqkv_ref[...],
                   preferred_element_type=f32) + bqkv_ref[...]            # (TB, 3C)
    # spatial tokens:  k | v
    kv_sp = (jnp.dot(t_sp.reshape(TB * S, C).astype(mxu_dtype), wkv_ref[...],
                     preferred_element_type=f32)
             + bkv_ref[...]).reshape(TB, S, 2 * C)                        # (TB, S, 2C)

    q_s = qkv0[:, :C] * scale                            # (TB, C)  scaled query
    k0 = qkv0[:, C:2 * C]                                # (TB, C)
    v0 = qkv0[:, 2 * C:]                                 # (TB, C)
    k_sp = kv_sp[:, :, :C]                               # (TB, S, C)
    v_sp = kv_sp[:, :, C:]                               # (TB, S, C)

    # ---- per-head scores, broadcast across each head's D lanes (f32 MXU) ----
    # bd is the constant (C, C) block-diagonal ones matrix: (q*k) @ bd is the
    # per-head segment sum, replicated to all D lanes of that head.
    bd = bd_ref[...]
    s0 = jnp.dot(q_s * k0, bd, preferred_element_type=f32)               # (TB, C)
    qk = (q_s[:, None, :] * k_sp).reshape(TB * S, C)
    s_sp = jnp.dot(qk, bd, preferred_element_type=f32).reshape(TB, S, C)

    # ---- softmax over the L = S+1 tokens (per lane; lanes of a head identical) ----
    m = jnp.maximum(jnp.max(s_sp, axis=1), s0)           # (TB, C)
    e0 = jnp.exp(s0 - m)                                 # (TB, C)
    e_sp = jnp.exp(s_sp - m[:, None, :])                 # (TB, S, C)
    denom = e0 + jnp.sum(e_sp, axis=1)                   # (TB, C)
    inv = pl.reciprocal(denom, approx=True)              # EUP slot (otherwise idle)

    attn = (e0 * inv) * v0 + jnp.sum(e_sp * inv[:, None, :] * v_sp, axis=1)  # (TB, C)

    # ---- output projection, lane-dense 2-D store ----
    out = jnp.dot(attn.astype(mxu_dtype), wc_ref[...],
                  preferred_element_type=f32) + bc_ref[...]               # (TB, O)
    out_ref[...] = out.astype(out_ref.dtype)


def _pick_batch_tile(batch: int) -> int:
    b8 = ((batch + 7) // 8) * 8
    if b8 <= 8:
        return 8
    # Large tiles amortize the per-grid-step overhead, but keep >= 2 grid steps
    # so the "parallel" batch axis can split across v7x's two TensorCores.
    half = (((b8 // 2) + 7) // 8) * 8
    return max(8, min(128, half))


def _vmem_limit_bytes(bytes_needed: int) -> int:
    cap = 48 * 1024 * 1024                    # conservative (v7x physical VMEM = 64 MiB)
    try:                                      # v5e/v6e (128 MiB) allow larger tiles
        cap = int(pltpu.get_tpu_info().vmem_capacity_bytes * 3 // 4)
    except Exception:
        pass
    return int(min(cap, max(32 * 1024 * 1024, bytes_needed)))


def attention_pool_2d(x, params, num_heads, *, block_b=None, mxu_dtype=jnp.bfloat16):
    """x: (B, C, H, W) NCHW like the PyTorch module. Returns (B, output_dim)."""
    B, C, Hs, Ws = x.shape
    S = Hs * Ws
    assert C % num_heads == 0, "embed_dim must be divisible by num_heads"
    D = C // num_heads
    O = params["wc"].shape[0]
    f32 = jnp.float32

    # Only wrapper-side movement of x: NCHW -> (B, S, C); dtype passes through
    # (no forced f32 upcast -> no extra HBM bytes when activations are bf16).
    xs = jnp.transpose(x.reshape(B, C, S), (0, 2, 1))

    if block_b is not None:
        TB = max(8, ((block_b + 7) // 8) * 8)
    else:
        TB = _pick_batch_tile(B)
    B_pad = ((B + TB - 1) // TB) * TB
    if B_pad != B:
        # Zero rows: softmax denominator stays positive, rows sliced off below.
        xs = jnp.pad(xs, ((0, B_pad - B), (0, 0), (0, 0)))

    # ---- host-side (params-only) preprocessing ----
    wqT = params["wq"].T.astype(f32)                     # PyTorch Linear weight is (out, in)
    wkT = params["wk"].T.astype(f32)
    wvT = params["wv"].T.astype(f32)
    wcT = params["wc"].T.astype(f32)                     # (C, O)
    wqkv = jnp.concatenate([wqT, wkT, wvT], axis=1).astype(mxu_dtype)   # (C, 3C)
    wkv = jnp.concatenate([wkT, wvT], axis=1).astype(mxu_dtype)         # (C, 2C)
    wcT = wcT.astype(mxu_dtype)

    bqkv = jnp.concatenate([params["bq"], params["bk"], params["bv"]]
                           ).astype(f32).reshape(1, 3 * C)
    bkv = jnp.concatenate([params["bk"], params["bv"]]).astype(f32).reshape(1, 2 * C)
    bc = params["bc"].astype(f32).reshape(1, O)

    pos = params["pos_emb"][:S + 1].astype(f32)          # (S+1, C)
    pos0 = pos[0:1, :]                                   # (1, C)
    pos_sp = pos[1:, :]                                  # (S, C)

    # Constant block-diagonal ones matrix (heads = contiguous D-lane blocks of C).
    head_of = np.arange(C) // D
    bd = jnp.asarray((head_of[:, None] == head_of[None, :]).astype(np.float32))  # (C, C)

    # ---- VMEM accounting -> buffering + limit choices ----
    xs_isz = jnp.dtype(xs.dtype).itemsize
    out_isz = jnp.dtype(x.dtype).itemsize
    mxu_isz = jnp.dtype(mxu_dtype).itemsize
    resident = ((5 * C * C + C * O) * mxu_isz                       # fused weights
                + (C + S * C + 3 * C + 2 * C + O + C * C) * 4)      # pos/biases/bd (f32)
    # Single-buffer the constant-index operands once they are big enough to
    # matter (halves their VMEM footprint with zero perf cost on any chip, and
    # is what keeps realistic embed_dims inside v7x's 64 MiB VMEM).
    single_buf = resident > (4 << 20)
    per_step = (2 * TB * S * C * xs_isz                  # double-buffered xs tile
                + 2 * TB * O * out_isz                   # double-buffered out tile
                + 12 * TB * S * C * 4                    # f32 intermediates (kv, scores, exp, ...)
                + 8 * TB * C * 4)                        # token-0 intermediates
    vmem_limit = _vmem_limit_bytes(per_step + resident * (1 if single_buf else 2)
                                   + (2 << 20))

    def rspec(shape):
        nd = len(shape)
        index_map = lambda b, _nd=nd: (0,) * _nd         # resident (constant-index)
        if single_buf:
            return pl.BlockSpec(shape, index_map, pipeline_mode=pl.Buffered(1))
        return pl.BlockSpec(shape, index_map)

    kernel = functools.partial(_attn_pool_kernel, num_heads=num_heads,
                               mxu_dtype=mxu_dtype)

    flops = int(B_pad * 2 * C * (3 * C + 2 * S * C + (S + 1) * C + O))
    transcendentals = int(B_pad * (S + 2) * C)
    bytes_accessed = int(xs_isz * B_pad * S * C + out_isz * B_pad * O
                         + mxu_isz * (5 * C * C + C * O)
                         + 4 * (C + S * C + 3 * C + 2 * C + O + C * C))

    out = pl.pallas_call(
        kernel,
        out_shape=jax.ShapeDtypeStruct((B_pad, O), x.dtype),
        grid_spec=pltpu.PrefetchScalarGridSpec(
            num_scalar_prefetch=0,
            grid=(B_pad // TB,),
            in_specs=[
                pl.BlockSpec((TB, S, C), lambda b: (b, 0, 0)),   # spatial tokens
                rspec((1, C)),                                   # pos-emb row 0
                rspec((S, C)),                                   # pos-emb rows 1..S
                rspec((C, 3 * C)),                               # [Wq|Wk|Wv]^T
                rspec((C, 2 * C)),                               # [Wk|Wv]^T
                rspec((C, O)),                                   # Wc^T
                rspec((1, 3 * C)),                               # [bq|bk|bv]
                rspec((1, 2 * C)),                               # [bk|bv]
                rspec((1, O)),                                   # bc
                rspec((C, C)),                                   # block-diag head mask
            ],
            out_specs=pl.BlockSpec((TB, O), lambda b: (b, 0)),
        ),
        compiler_params=pltpu.CompilerParams(
            dimension_semantics=("parallel",),          # batch tiles shard across TCs (v7x)
            vmem_limit_bytes=vmem_limit,
        ),
        cost_estimate=pl.CostEstimate(flops=flops,
                                      transcendentals=transcendentals,
                                      bytes_accessed=bytes_accessed),
    )(xs, pos0, pos_sp, wqkv, wkv, wcT, bqkv, bkv, bc, bd)

    return out[:B]                                      # (B, O) -- matches .squeeze(0)


def attention_pool_2d_reference(x, params, num_heads):
    """Pure-JAX reference mirroring F.multi_head_attention_forward semantics."""
    B, C, Hs, Ws = x.shape
    S = Hs * Ws
    tokens = jnp.transpose(x.reshape(B, C, S), (0, 2, 1)).astype(jnp.float32)  # (B, S, C)
    mean_tok = jnp.mean(tokens, axis=1, keepdims=True)
    tokens = jnp.concatenate([mean_tok, tokens], axis=1)            # (B, L, C)
    L = S + 1
    tokens = tokens + params["pos_emb"][None, :L, :].astype(tokens.dtype)

    D = C // num_heads
    scale = 1.0 / math.sqrt(D)
    q = tokens[:, :1, :] @ params["wq"].T + params["bq"]            # (B, 1, C)
    k = tokens @ params["wk"].T + params["bk"]                      # (B, L, C)
    v = tokens @ params["wv"].T + params["bv"]

    qh = q.reshape(B, 1, num_heads, D).transpose(0, 2, 1, 3) * scale
    kh = k.reshape(B, L, num_heads, D).transpose(0, 2, 1, 3)
    vh = v.reshape(B, L, num_heads, D).transpose(0, 2, 1, 3)
    s = jnp.einsum("bhqd,bhkd->bhqk", qh, kh)
    p = jax.nn.softmax(s, axis=-1)
    o = jnp.einsum("bhqk,bhkd->bhqd", p, vh)
    o = o.transpose(0, 2, 1, 3).reshape(B, 1, C)
    out = o @ params["wc"].T + params["bc"]
    return out[:, 0, :]


def init_params(key, spatial_dim, embed_dim, output_dim):
    ks = jax.random.split(key, 9)
    return {
        "pos_emb": jax.random.normal(ks[0], (spatial_dim + 1, embed_dim),
                                     jnp.float32) / math.sqrt(embed_dim),
        "wq": jax.random.normal(ks[1], (embed_dim, embed_dim), jnp.float32) * 0.05,
        "bq": jax.random.normal(ks[2], (embed_dim,), jnp.float32) * 0.05,
        "wk": jax.random.normal(ks[3], (embed_dim, embed_dim), jnp.float32) * 0.05,
        "bk": jax.random.normal(ks[4], (embed_dim,), jnp.float32) * 0.05,
        "wv": jax.random.normal(ks[5], (embed_dim, embed_dim), jnp.float32) * 0.05,
        "bv": jax.random.normal(ks[6], (embed_dim,), jnp.float32) * 0.05,
        "wc": jax.random.normal(ks[7], (output_dim, embed_dim), jnp.float32) * 0.05,
        "bc": jax.random.normal(ks[8], (output_dim,), jnp.float32) * 0.05,
    }


if __name__ == "__main__":
    # spatial_dim = H*W = 16, embed_dim = 128, 8 heads (head_dim = 16), output_dim = 128
    B, embed_dim, Hs, Ws = 16, 128, 4, 4
    num_heads = 8
    output_dim = 128
    spatial_dim = Hs * Ws

    key = jax.random.PRNGKey(0)
    kx, kp = jax.random.split(key)
    x = jax.random.normal(kx, (B, embed_dim, Hs, Ws), jnp.float32)   # NCHW like PyTorch
    params = init_params(kp, spatial_dim, embed_dim, output_dim)

    ref = jax.block_until_ready(attention_pool_2d_reference(x, params, num_heads))

    # f32-MXU path: only the EUP approximate reciprocal differs from the reference.
    out_f32 = jax.block_until_ready(
        attention_pool_2d(x, params, num_heads, mxu_dtype=jnp.float32))
    assert out_f32.shape == (B, output_dim)
    np.testing.assert_allclose(np.asarray(out_f32), np.asarray(ref), rtol=3e-3, atol=3e-3)

    # Default bf16-MXU path (f32 accumulation / softmax): looser tolerance.
    out = jax.block_until_ready(attention_pool_2d(x, params, num_heads))
    assert out.shape == (B, output_dim)
    np.testing.assert_allclose(np.asarray(out), np.asarray(ref), rtol=5e-2, atol=1e-2)

    # Batch-padding path (B not a multiple of the batch tile).
    x_small = x[:3]
    out_small = jax.block_until_ready(attention_pool_2d(x_small, params, num_heads))
    ref_small = attention_pool_2d_reference(x_small, params, num_heads)
    np.testing.assert_allclose(np.asarray(out_small), np.asarray(ref_small),
                               rtol=5e-2, atol=1e-2)

    print("KERNEL_OK")
</pallas_src>

<mosaic_0001>
module attributes {stable_mosaic.version = 11 : i64} {
  func.func @_attn_pool_kernel(%arg0: i32, %arg1: memref<8x16x128xf32, #tpu.memory_space<vmem>>, %arg2: memref<1x128xf32, #tpu.memory_space<vmem>>, %arg3: memref<16x128xf32, #tpu.memory_space<vmem>>, %arg4: memref<128x384xf32, #tpu.memory_space<vmem>>, %arg5: memref<128x256xf32, #tpu.memory_space<vmem>>, %arg6: memref<128x128xf32, #tpu.memory_space<vmem>>, %arg7: memref<1x384xf32, #tpu.memory_space<vmem>>, %arg8: memref<1x256xf32, #tpu.memory_space<vmem>>, %arg9: memref<1x128xf32, #tpu.memory_space<vmem>>, %arg10: memref<128x128xf32, #tpu.memory_space<vmem>>, %arg11: memref<8x128xf32, #tpu.memory_space<vmem>>) attributes {dimension_semantics = [#tpu.dimension_semantics<parallel>], iteration_bounds = array<i64: 2>, scalar_prefetch = 0 : i64, scratch_operands = 0 : i64, tpu.core_type = #tpu.core_type<tc>, window_params = [{transform_indices = @transform_0, window_bounds = array<i64: 8, 16, 128>}, {pipeline_mode = #tpu.pipeline_mode<synchronous>, transform_indices = @transform_1, window_bounds = array<i64: 1, 128>}, {pipeline_mode = #tpu.pipeline_mode<synchronous>, transform_indices = @transform_2, window_bounds = array<i64: 16, 128>}, {pipeline_mode = #tpu.pipeline_mode<synchronous>, transform_indices = @transform_3, window_bounds = array<i64: 128, 384>}, {pipeline_mode = #tpu.pipeline_mode<synchronous>, transform_indices = @transform_4, window_bounds = array<i64: 128, 256>}, {pipeline_mode = #tpu.pipeline_mode<synchronous>, transform_indices = @transform_5, window_bounds = array<i64: 128, 128>}, {pipeline_mode = #tpu.pipeline_mode<synchronous>, transform_indices = @transform_6, window_bounds = array<i64: 1, 384>}, {pipeline_mode = #tpu.pipeline_mode<synchronous>, transform_indices = @transform_7, window_bounds = array<i64: 1, 256>}, {pipeline_mode = #tpu.pipeline_mode<synchronous>, transform_indices = @transform_8, window_bounds = array<i64: 1, 128>}, {pipeline_mode = #tpu.pipeline_mode<synchronous>, transform_indices = @transform_9, window_bounds = array<i64: 128, 128>}, {transform_indices = @transform_10, window_bounds = array<i64: 8, 128>}]} {
    %c0 = arith.constant 0 : index
    %c0_0 = arith.constant 0 : index
    %c0_1 = arith.constant 0 : index
    %0 = vector.load %arg1[%c0, %c0_0, %c0_1] : memref<8x16x128xf32, #tpu.memory_space<vmem>>, vector<8x16x128xf32>
    %cst = arith.constant dense<0.000000e+00> : vector<8x128xf32>
    %1 = vector.multi_reduction <add>, %0, %cst [1] : vector<8x16x128xf32> to vector<8x128xf32>
    %cst_2 = arith.constant 1.600000e+01 : f32
    %2 = vector.broadcast %cst_2 : f32 to vector<8x128xf32>
    %3 = arith.divf %1, %2 : vector<8x128xf32>
    %c0_3 = arith.constant 0 : index
    %c0_4 = arith.constant 0 : index
    %4 = vector.load %arg2[%c0_3, %c0_4] : memref<1x128xf32, #tpu.memory_space<vmem>>, vector<1x128xf32>
    %5 = vector.broadcast %4 : vector<1x128xf32> to vector<8x128xf32>
    %6 = arith.addf %3, %5 : vector<8x128xf32>
    %c0_5 = arith.constant 0 : index
    %c0_6 = arith.constant 0 : index
    %7 = vector.load %arg3[%c0_5, %c0_6] : memref<16x128xf32, #tpu.memory_space<vmem>>, vector<16x128xf32>
    %8 = vector.shape_cast %7 : vector<16x128xf32> to vector<1x16x128xf32>
    %9 = vector.broadcast %8 : vector<1x16x128xf32> to vector<8x16x128xf32>
    %10 = arith.addf %0, %9 : vector<8x16x128xf32>
    %c0_7 = arith.constant 0 : index
    %c0_8 = arith.constant 0 : index
    %11 = vector.load %arg4[%c0_7, %c0_8] : memref<128x384xf32, #tpu.memory_space<vmem>>, vector<128x384xf32>
    %cst_9 = arith.constant dense<0.000000e+00> : vector<8x384xf32>
    %12 = tpu.matmul %6, %11, %cst_9 {dimension_numbers = #tpu.dot_dimension_numbers<[1], [0], [0], [1], [0, 0, 1, 1], [], []>} : vector<8x128xf32>, vector<128x384xf32>, vector<8x384xf32> -> vector<8x384xf32>
    %c0_10 = arith.constant 0 : index
    %c0_11 = arith.constant 0 : index
    %13 = vector.load %arg7[%c0_10, %c0_11] : memref<1x384xf32, #tpu.memory_space<vmem>>, vector<1x384xf32>
    %14 = vector.broadcast %13 : vector<1x384xf32> to vector<8x384xf32>
    %15 = arith.addf %12, %14 : vector<8x384xf32>
    %16 = vector.shape_cast %10 : vector<8x16x128xf32> to vector<128x128xf32>
    %c0_12 = arith.constant 0 : index
    %c0_13 = arith.constant 0 : index
    %17 = vector.load %arg5[%c0_12, %c0_13] : memref<128x256xf32, #tpu.memory_space<vmem>>, vector<128x256xf32>
    %cst_14 = arith.constant dense<0.000000e+00> : vector<128x256xf32>
    %18 = tpu.matmul %16, %17, %cst_14 {dimension_numbers = #tpu.dot_dimension_numbers<[1], [0], [0], [1], [0, 0, 1, 1], [], []>} : vector<128x128xf32>, vector<128x256xf32>, vector<128x256xf32> -> vector<128x256xf32>
    %c0_15 = arith.constant 0 : index
    %c0_16 = arith.constant 0 : index
    %19 = vector.load %arg8[%c0_15, %c0_16] : memref<1x256xf32, #tpu.memory_space<vmem>>, vector<1x256xf32>
    %20 = vector.broadcast %19 : vector<1x256xf32> to vector<128x256xf32>
    %21 = arith.addf %18, %20 : vector<128x256xf32>
    %22 = vector.shape_cast %21 : vector<128x256xf32> to vector<8x16x256xf32>
    %23 = vector.extract_strided_slice %15 {offsets = [0, 0], sizes = [8, 128], strides = [1, 1]} : vector<8x384xf32> to vector<8x128xf32>
    %cst_17 = arith.constant 2.500000e-01 : f32
    %24 = vector.broadcast %cst_17 : f32 to vector<8x128xf32>
    %25 = arith.mulf %23, %24 : vector<8x128xf32>
    %26 = vector.extract_strided_slice %15 {offsets = [0, 128], sizes = [8, 128], strides = [1, 1]} : vector<8x384xf32> to vector<8x128xf32>
    %27 = vector.extract_strided_slice %15 {offsets = [0, 256], sizes = [8, 128], strides = [1, 1]} : vector<8x384xf32> to vector<8x128xf32>
    %28 = vector.extract_strided_slice %22 {offsets = [0, 0, 0], sizes = [8, 16, 128], strides = [1, 1, 1]} : vector<8x16x256xf32> to vector<8x16x128xf32>
    %29 = vector.extract_strided_slice %22 {offsets = [0, 0, 128], sizes = [8, 16, 128], strides = [1, 1, 1]} : vector<8x16x256xf32> to vector<8x16x128xf32>
    %c0_18 = arith.constant 0 : index
    %c0_19 = arith.constant 0 : index
    %30 = vector.load %arg10[%c0_18, %c0_19] : memref<128x128xf32, #tpu.memory_space<vmem>>, vector<128x128xf32>
    %31 = arith.mulf %25, %26 : vector<8x128xf32>
    %cst_20 = arith.constant dense<0.000000e+00> : vector<8x128xf32>
    %32 = tpu.matmul %31, %30, %cst_20 {dimension_numbers = #tpu.dot_dimension_numbers<[1], [0], [0], [1], [0, 0, 1, 1], [], []>} : vector<8x128xf32>, vector<128x128xf32>, vector<8x128xf32> -> vector<8x128xf32>
    %33 = vector.shape_cast %25 : vector<8x128xf32> to vector<8x1x128xf32>
    %34 = vector.broadcast %33 : vector<8x1x128xf32> to vector<8x16x128xf32>
    %35 = arith.mulf %34, %28 : vector<8x16x128xf32>
    %36 = vector.shape_cast %35 : vector<8x16x128xf32> to vector<128x128xf32>
    %cst_21 = arith.constant dense<0.000000e+00> : vector<128x128xf32>
    %37 = tpu.matmul %36, %30, %cst_21 {dimension_numbers = #tpu.dot_dimension_numbers<[1], [0], [0], [1], [0, 0, 1, 1], [], []>} : vector<128x128xf32>, vector<128x128xf32>, vector<128x128xf32> -> vector<128x128xf32>
    %38 = vector.shape_cast %37 : vector<128x128xf32> to vector<8x16x128xf32>
    %cst_22 = arith.constant dense<0xFF800000> : vector<8x128xf32>
    %39 = vector.multi_reduction <maximumf>, %38, %cst_22 [1] : vector<8x16x128xf32> to vector<8x128xf32>
    %40 = arith.maximumf %39, %32 : vector<8x128xf32>
    %41 = arith.subf %32, %40 : vector<8x128xf32>
    %42 = math.exp %41 : vector<8x128xf32>
    %43 = vector.shape_cast %40 : vector<8x128xf32> to vector<8x1x128xf32>
    %44 = vector.broadcast %43 : vector<8x1x128xf32> to vector<8x16x128xf32>
    %45 = arith.subf %38, %44 : vector<8x16x128xf32>
    %46 = math.exp %45 : vector<8x16x128xf32>
    %cst_23 = arith.constant dense<0.000000e+00> : vector<8x128xf32>
    %47 = vector.multi_reduction <add>, %46, %cst_23 [1] : vector<8x16x128xf32> to vector<8x128xf32>
    %48 = arith.addf %42, %47 : vector<8x128xf32>
    %49 = tpu.reciprocal %48 {approx = true} : vector<8x128xf32> -> vector<8x128xf32>
    %50 = arith.mulf %42, %49 : vector<8x128xf32>
    %51 = arith.mulf %50, %27 : vector<8x128xf32>
    %52 = vector.shape_cast %49 : vector<8x128xf32> to vector<8x1x128xf32>
    %53 = vector.broadcast %52 : vector<8x1x128xf32> to vector<8x16x128xf32>
    %54 = arith.mulf %46, %53 : vector<8x16x128xf32>
    %55 = arith.mulf %54, %29 : vector<8x16x128xf32>
    %cst_24 = arith.constant dense<0.000000e+00> : vector<8x128xf32>
    %56 = vector.multi_reduction <add>, %55, %cst_24 [1] : vector<8x16x128xf32> to vector<8x128xf32>
    %57 = arith.addf %51, %56 : vector<8x128xf32>
    %c0_25 = arith.constant 0 : index
    %c0_26 = arith.constant 0 : index
    %58 = vector.load %arg6[%c0_25, %c0_26] : memref<128x128xf32, #tpu.memory_space<vmem>>, vector<128x128xf32>
    %cst_27 = arith.constant dense<0.000000e+00> : vector<8x128xf32>
    %59 = tpu.matmul %57, %58, %cst_27 {dimension_numbers = #tpu.dot_dimension_numbers<[1], [0], [0], [1], [0, 0, 1, 1], [], []>} : vector<8x128xf32>, vector<128x128xf32>, vector<8x128xf32> -> vector<8x128xf32>
    %c0_28 = arith.constant 0 : index
    %c0_29 = arith.constant 0 : index
    %60 = vector.load %arg9[%c0_28, %c0_29] : memref<1x128xf32, #tpu.memory_space<vmem>>, vector<1x128xf32>
    %61 = vector.broadcast %60 : vector<1x128xf32> to vector<8x128xf32>
    %62 = arith.addf %59, %61 : vector<8x128xf32>
    %c0_30 = arith.constant 0 : index
    %c0_31 = arith.constant 0 : index
    %63 = vector.load %arg11[%c0_30, %c0_31] : memref<8x128xf32, #tpu.memory_space<vmem>>, vector<8x128xf32>
    tpu.vector_store %arg11[%c0_30, %c0_31], %62 {strides = array<i32>} : memref<8x128xf32, #tpu.memory_space<vmem>>, vector<8x128xf32>,
    return
  }
  func.func @transform_0(%arg0: i32) -> (i32, i32, i32) {
    %c0_i32 = arith.constant 0 : i32
    %c0_i32_0 = arith.constant 0 : i32
    %c0_i32_1 = arith.constant 0 : i32
    return %arg0, %c0_i32, %c0_i32_0 : i32, i32, i32
  }
  func.func @transform_1(%arg0: i32) -> (i32, i32) {
    %c0_i32 = arith.constant 0 : i32
    %c0_i32_0 = arith.constant 0 : i32
    %c0_i32_1 = arith.constant 0 : i32
    return %c0_i32, %c0_i32_0 : i32, i32
  }
  func.func @transform_2(%arg0: i32) -> (i32, i32) {
    %c0_i32 = arith.constant 0 : i32
    %c0_i32_0 = arith.constant 0 : i32
    %c0_i32_1 = arith.constant 0 : i32
    return %c0_i32, %c0_i32_0 : i32, i32
  }
  func.func @transform_3(%arg0: i32) -> (i32, i32) {
    %c0_i32 = arith.constant 0 : i32
    %c0_i32_0 = arith.constant 0 : i32
    %c0_i32_1 = arith.constant 0 : i32
    return %c0_i32, %c0_i32_0 : i32, i32
  }
  func.func @transform_4(%arg0: i32) -> (i32, i32) {
    %c0_i32 = arith.constant 0 : i32
    %c0_i32_0 = arith.constant 0 : i32
    %c0_i32_1 = arith.constant 0 : i32
    return %c0_i32, %c0_i32_0 : i32, i32
  }
  func.func @transform_5(%arg0: i32) -> (i32, i32) {
    %c0_i32 = arith.constant 0 : i32
    %c0_i32_0 = arith.constant 0 : i32
    %c0_i32_1 = arith.constant 0 : i32
    return %c0_i32, %c0_i32_0 : i32, i32
  }
  func.func @transform_6(%arg0: i32) -> (i32, i32) {
    %c0_i32 = arith.constant 0 : i32
    %c0_i32_0 = arith.constant 0 : i32
    %c0_i32_1 = arith.constant 0 : i32
    return %c0_i32, %c0_i32_0 : i32, i32
  }
  func.func @transform_7(%arg0: i32) -> (i32, i32) {
    %c0_i32 = arith.constant 0 : i32
    %c0_i32_0 = arith.constant 0 : i32
    %c0_i32_1 = arith.constant 0 : i32
    return %c0_i32, %c0_i32_0 : i32, i32
  }
  func.func @transform_8(%arg0: i32) -> (i32, i32) {
    %c0_i32 = arith.constant 0 : i32
    %c0_i32_0 = arith.constant 0 : i32
    %c0_i32_1 = arith.constant 0 : i32
    return %c0_i32, %c0_i32_0 : i32, i32
  }
  func.func @transform_9(%arg0: i32) -> (i32, i32) {
    %c0_i32 = arith.constant 0 : i32
    %c0_i32_0 = arith.constant 0 : i32
    %c0_i32_1 = arith.constant 0 : i32
    return %c0_i32, %c0_i32_0 : i32, i32
  }
  func.func @transform_10(%arg0: i32) -> (i32, i32) {
    %c0_i32 = arith.constant 0 : i32
    %c0_i32_0 = arith.constant 0 : i32
    return %arg0, %c0_i32 : i32, i32
  }
}

</mosaic_0001>

<bundles_post_ra>
// kernel: tpu_custom_call.1
= control target key start
LH: loop header
LB: loop body
LE: loop exit
PB: predicated region body
PF: predicated region fallthrough
CT: control target
= control target key end

     0   :  { %s3792_s0 = inlined_call_operand.hbm [shape: f32[16,16,128], index: 0, kind: input, shape index: {}]   ;;  %s3793_s1 = inlined_call_operand.vmem [shape: f32[1,128], index: 1, kind: input, shape index: {}]   ;;  %s3794_s2 = inlined_call_operand.hbm [shape: f32[16,128], index: 2, kind: input, shape index: {}]   ;;  %s3795_s3 = inlined_call_operand.hbm [shape: f32[128,384], index: 3, kind: input, shape index: {}]   ;;  %s3796_s4 = inlined_call_operand.hbm [shape: f32[128,256], index: 4, kind: input, shape index: {}]   ;;  %s3797_s5 = inlined_call_operand.hbm [shape: f32[128,128], index: 5, kind: input, shape index: {}]   ;;  %s3798_s6 = inlined_call_operand.vmem [shape: f32[1,384], index: 6, kind: input, shape index: {}]   ;;  %s3799_s7 = inlined_call_operand.vmem [shape: f32[1,256], index: 7, kind: input, shape index: {}]   ;;  %s3800_s8 = inlined_call_operand.vmem [shape: f32[1,128], index: 8, kind: input, shape index: {}]   ;;  %s3801_s9 = inlined_call_operand.hbm [shape: f32[128,128], index: 9, kind: input, shape index: {}]   ;;  %s3802_s10 = inlined_call_operand.hbm [shape: f32[16,128], index: 10, kind: output, shape index: {}]  }
   0x1   :  { %3811 = sst [smem:[#allocation19_spill]] %s3794_s2 }
   0x2   :  { %3812 = sst [smem:[#allocation20_spill]] %s3796_s4 }
   0x3   :  { %3813 = sst [smem:[#allocation21_spill]] %s3800_s8 }
   0x4   :  { %3814 = sst [smem:[#allocation22_spill]] %s3802_s10 }
   0x5   :  { %15 = vsyncpa [#allocation3], 0 }
   0x6   :  { %17 = vsyncpa [#allocation3 + $0x1], 0 }
   0x7   :  { %18 = vsyncpa [#allocation6], 0 }
   0x8   :  { %19 = vsyncpa [#allocation9], 0 }
   0x9   :  { %20 = vsyncpa [#allocation12], 0 }
   0xa   :  { %21 = vsyncpa [#allocation4], 0 }
   0xb   :  { %23 = vsyncpa [#allocation4 + $0x1], 0  ;;  %s2935_s13 = smov 0   ;;  %s2937_s14 = smov 0  }
   0xc   :  { %s2939_s15 = smov 0   ;;  %s2941_s16 = smov 0  }
   0xd LB: > { %s2863_s17 = smov [#allocation5]   ;;  %s2956_s19 = sadd.s32 4294967295, %s2861_s16   ;;  %s2861_s16 = sphi %s2941_s16, %s3842_s16   ;;  %s2857_s15 = sphi %s2939_s15, %s3841_s15   ;;  %s2853_s14 = sphi %s2937_s14, %s3840_s14   ;;  %s2849_s13 = sphi %s2935_s13, %s3839_s13  }
   0xe   : > { %s290_s18 = sshll.u32 %s2863_s17, 4  ;;  %p2031_p0 = scmp.ge.s32.totalorder %s2861_s16, 1  ;;  %s2961_s18 = int_to_ptr.vmem [resolvable:$true] %s290_s18 }
   0xf   : > { %p3806_p1 = scmp.eq.s32.totalorder %s2956_s19, 0  ;;  %p275_p2 = scmp.lt.s32.totalorder %s2861_s16, 3 }
  0x10   : > { %s2864_s21 = smov [#allocation8]   ;;  %s2865_s24 = smov [#allocation7]  }
  0x11   : > { %p2963_p3 = pnand %p2031_p0, %p275_p2  ;;  %s316_s22 = sshll.u32 %s2864_s21, 4  ;;  %s2976_s22 = int_to_ptr.vmem [resolvable:$true] %s316_s22 }
  0x12   : > { %s2978_s25 = sshll.u32 %s2865_s24, 4  ;;  %s3817_s2 = sld [smem:[#allocation19_spill]]  ;;  %s304_s25 = int_to_ptr.vmem [resolvable:$true] %s2978_s25 }
  0x13   : > { %s3815_s20 = scalar_select %p2963_p3, 1, 0 }
  0x14   : > { %p2494_p5 = pneg %p2963_p3 }
  0x16   : > { %p2972_p6 = pnand %p2494_p5, %p3806_p1 }
  0x18   : > { %s2613_s28 = scalar_lea.hbm %s3817_s2, 256  ;;  %p2988_p8 = pneg %p2972_p6 }
  0x19   : > { %p2614_p7 = scmp.ne.s32.totalorder %s3817_s2, %s2613_s28  ;;  %p2620_p11 = scmp.lt.u32.totalorder %s2613_s28, %s3817_s2 }
  0x1b   : > { %p2616_p9 = pnand %p2988_p8, %p2614_p7 }
  0x1d   : > { %p2617_p10 = pneg %p2616_p9 }
  0x1f   : > { %p2622_p12 = pnand %p2620_p11, %p2617_p10 }
  0x21   : > { %2625 = shalt.err (!%p2622_p12)
}
  0x22   : > { %s2626_s21 = scalar_lea.vmem %s2961_s18, 256  ;;  %p2634_p5 = scmp.lt.s32.totalorder %s2961_s18, %s2961_s18 }
  0x23   : > { %p2627_p13 = scmp.ne.s32.totalorder %s2961_s18, %s2626_s21  ;;  %p2635_p4 = scmp.lt.s32.totalorder %s2626_s21, %s2626_s21 }
  0x25   : > { %p2629_p0 = pnand %p2627_p13, %p2988_p8  ;;  %p2636_p7 = por %p2635_p4, %p2634_p5 }
  0x27   : > { %p2630_p2 = pneg %p2629_p0 }
  0x29   : > { %p2637_p9 = pnand %p2636_p7, %p2630_p2 }
  0x2b   : > { %2640 = shalt.err (!%p2637_p9)
}
  0x2c   : > { %s3804_s24 = smov 128   ;;  %s3808_s26 = smov 8  }
  0x2d   : > { %2497 = dma.hbm_to_vmem [thread:$0]  (!%p2972_p6), %s3817_s2, 256, %s2961_s18, [#allocation6], %s3804_s24, %s3804_s24, %s3808_s26  }
  0x2e   : > { %s3819_s4 = sld [smem:[#allocation20_spill]] }
  0x34   : > { %s2641_s12 = scalar_lea.hbm %s3819_s4, 4096 }
  0x35   : > { %p2642_p4 = scmp.ne.s32.totalorder %s3819_s4, %s2641_s12  ;;  %p2648_p12 = scmp.lt.u32.totalorder %s2641_s12, %s3819_s4 }
  0x37   : > { %p2644_p10 = pnand %p2642_p4, %p2988_p8 }
  0x39   : > { %p2645_p11 = pneg %p2644_p10 }
  0x3b   : > { %p2650_p13 = pnand %p2648_p12, %p2645_p11 }
  0x3d   : > { %2653 = shalt.err (!%p2650_p13)
}
  0x3e   : > { %s2654_s18 = scalar_lea.vmem %s2976_s22, 4096  ;;  %p2662_p7 = scmp.lt.s32.totalorder %s2976_s22, %s2976_s22 }
  0x3f   : > { %p2655_p0 = scmp.ne.s32.totalorder %s2976_s22, %s2654_s18  ;;  %p2663_p9 = scmp.lt.s32.totalorder %s2654_s18, %s2654_s18 }
  0x41   : > { %p2657_p2 = pnand %p2655_p0, %p2988_p8  ;;  %p2664_p4 = por %p2663_p9, %p2662_p7 }
  0x43   : > { %p2658_p5 = pneg %p2657_p2 }
  0x45   : > { %p2665_p10 = pnand %p2664_p4, %p2658_p5 }
  0x47   : > { %2668 = shalt.err (!%p2665_p10)
}
  0x48   : > { %s2868_s27 = smov 256   ;;  %s2869_s8 = smov 16  }
  0x49   : > { %2503 = dma.hbm_to_vmem [thread:$0]  (!%p2972_p6), %s3819_s4, 4096, %s2976_s22, [#allocation9], %s2868_s27, %s2868_s27, %s2869_s8  }
  0x4a   : > { %s2669_s12 = scalar_lea.hbm %s3795_s3, 6144 }
  0x4b   : > { %p2670_p11 = scmp.ne.s32.totalorder %s3795_s3, %s2669_s12  ;;  %p2676_p0 = scmp.lt.u32.totalorder %s2669_s12, %s3795_s3 }
  0x4d   : > { %p2672_p12 = pnand %p2670_p11, %p2988_p8 }
  0x4f   : > { %p2673_p13 = pneg %p2672_p12 }
  0x51   : > { %p2678_p2 = pnand %p2676_p0, %p2673_p13 }
  0x53   : > { %2681 = shalt.err (!%p2678_p2)
}
  0x54   : > { %s2682_s10 = scalar_lea.vmem %s304_s25, 6144  ;;  %p2690_p4 = scmp.lt.s32.totalorder %s304_s25, %s304_s25 }
  0x55   : > { %p2683_p5 = scmp.ne.s32.totalorder %s304_s25, %s2682_s10  ;;  %p2691_p10 = scmp.lt.s32.totalorder %s2682_s10, %s2682_s10 }
  0x57   : > { %p2685_p7 = pnand %p2683_p5, %p2988_p8  ;;  %p2692_p1 = por %p2691_p10, %p2690_p4 }
  0x59   : > { %p2686_p9 = pneg %p2685_p7 }
  0x5b   : > { %p2693_p3 = pnand %p2692_p1, %p2686_p9 }
  0x5d   : > { %2696 = shalt.err (!%p2693_p3)
}
  0x5e   : > { %s2870_s22 = smov 384   ;;  %s2871_s27 = smov 24  }
  0x5f   : > { %2500 = dma.hbm_to_vmem [thread:$0]  (!%p2972_p6), %s3795_s3, 6144, %s304_s25, [#allocation6], %s2870_s22, %s2870_s22, %s2871_s27  }
  0x60   : > { %s2872_s28 = smov [#allocation10]   ;;  %s2873_s30 = smov [#allocation11]  }
  0x61   : > { %s329_s29 = sshll.u32 %s2872_s28, 4  ;;  %s351_s12 = sshll.u32 %s2873_s30, 4  ;;  %s330_s29 = int_to_ptr.vmem [resolvable:$true] %s329_s29  ;;  %s352_s12 = int_to_ptr.vmem [resolvable:$true] %s351_s12 }
  0x62   : > { %s2697_s18 = scalar_lea.hbm %s3797_s5, 2048 }
  0x63   : > { %p2698_p1 = scmp.ne.s32.totalorder %s3797_s5, %s2697_s18  ;;  %p2704_p12 = scmp.lt.u32.totalorder %s2697_s18, %s3797_s5 }
  0x65   : > { %p2700_p3 = pnand %p2698_p1, %p2988_p8 }
  0x67   : > { %p2701_p11 = pneg %p2700_p3 }
  0x69   : > { %p2706_p13 = pnand %p2704_p12, %p2701_p11 }
  0x6b   : > { %2709 = shalt.err (!%p2706_p13)
}
  0x6c   : > { %s2710_s25 = scalar_lea.vmem %s330_s29, 2048  ;;  %p2718_p7 = scmp.lt.s32.totalorder %s330_s29, %s330_s29 }
  0x6d   : > { %p2711_p0 = scmp.ne.s32.totalorder %s330_s29, %s2710_s25  ;;  %p2719_p9 = scmp.lt.s32.totalorder %s2710_s25, %s2710_s25 }
  0x6f   : > { %p2713_p2 = pnand %p2711_p0, %p2988_p8  ;;  %p2720_p4 = por %p2719_p9, %p2718_p7 }
  0x71   : > { %p2714_p5 = pneg %p2713_p2 }
  0x73   : > { %p2721_p10 = pnand %p2720_p4, %p2714_p5 }
  0x75   : > { %2724 = shalt.err (!%p2721_p10)
}
  0x76   : > { %s3820_s26 = smov 8   ;;  %s3821_s22 = smov 128  }
  0x77   : > { %2506 = dma.hbm_to_vmem [thread:$0]  (!%p2972_p6), %s3797_s5, 2048, %s330_s29, [#allocation9], %s3821_s22, %s3821_s22, %s3820_s26  }
  0x78   : > { %s2725_s8 = scalar_lea.hbm %s3801_s9, 2048 }
  0x79   : > { %p2726_p1 = scmp.ne.s32.totalorder %s3801_s9, %s2725_s8  ;;  %p2732_p12 = scmp.lt.u32.totalorder %s2725_s8, %s3801_s9 }
  0x7b   : > { %p2728_p3 = pnand %p2726_p1, %p2988_p8 }
  0x7d   : > { %p2729_p11 = pneg %p2728_p3 }
  0x7f   : > { %p2734_p13 = pnand %p2732_p12, %p2729_p11 }
  0x81   : > { %2737 = shalt.err (!%p2734_p13)
}
  0x82   : > { %s2738_s18 = scalar_lea.vmem %s352_s12, 2048  ;;  %p2746_p7 = scmp.lt.s32.totalorder %s352_s12, %s352_s12 }
  0x83   : > { %p2739_p0 = scmp.ne.s32.totalorder %s352_s12, %s2738_s18  ;;  %p2747_p9 = scmp.lt.s32.totalorder %s2738_s18, %s2738_s18 }
  0x85   : > { %p2741_p2 = pnand %p2739_p0, %p2988_p8  ;;  %p2748_p4 = por %p2747_p9, %p2746_p7 }
  0x87   : > { %p2742_p5 = pneg %p2741_p2 }
  0x89   : > { %p2749_p10 = pnand %p2748_p4, %p2742_p5 }
  0x8b   : > { %2752 = shalt.err (!%p2749_p10)
}
  0x8c   : > { %2509 = dma.hbm_to_vmem [thread:$0]  (!%p2972_p6), %s3801_s9, 2048, %s352_s12, [#allocation12], %s3821_s22, %s3821_s22, %s3820_s26  }
  0x8d   : > { %s2030_s23 = sadd.s32 4294967294, %s2861_s16   ;;  %s3098_s11 = sadd.s32 1, %s2861_s16  }
  0x8e   : > { %s36_s25 = sadd.s32 1, %s2857_s15  ;;  %s33_s2 = ssub.s32 %s2861_s16, %s3098_s11 }
  0x8f   : > { %p43_p8 = scmp.ne.s32.totalorder %s2857_s15, %s2853_s14  ;;  %p34_p1 = scmp.eq.s32.totalorder %s33_s2, 0 }
  0x90   : > { %p44_p3 = scmp.eq.s32.totalorder %s2861_s16, 0  ;;  %p49_p11 = scmp.ne.s32.totalorder %s2853_s14, %s2849_s13 }
  0x91   : > { %p262_p12 = scmp.eq.s32.totalorder %s2956_s19, 1  ;;  %p3822_p0 = scmp.eq.s32.totalorder %s2956_s19, 0 }
  0x92   : > { %s3110_s4 = scalar_select %p34_p1, %s2857_s15, %s36_s25  }
  0x93   : > { %p45_p13 = por %p44_p3, %p43_p8  ;;  %p3114_p2 = por %p3822_p0, %p49_p11 }
  0x94   : > { %p3118_p6 = por %p262_p12, %p43_p8  ;;  %p268_p5 = scmp.eq.s32.totalorder %s2030_s23, 1 }
  0x95   : > { %p2523_p7 = scmp.lt.s32.totalorder %s2861_s16, 2  ;;  %s365_s24 = sand.u32 1, %s2857_s15  }
  0x96   : > { %s3824_s12 = scalar_select %p3118_p6, 1, 0 }
  0x97   : > { %p3124_p9 = por %p268_p5, %p49_p11  ;;  %s2038_s28 = sshll.u32 %s365_s24, 7 }
  0x98   : > { %s2057_s30 = sshll.u32 %s2861_s16, 11  ;;  %s369_s29 = scalar_lea.vmem [#allocation2], %s2038_s28 }
  0x99   : > { %s3825_s8 = scalar_select %p3124_p9, 1, 0 }
  0x9a   : > { %s3132_s18 = scalar_lea.hbm %s3792_s0, %s2057_s30  ;;  %s377_s10 = sshll.u32 %s369_s29, 4  ;;  %s3138_s10 = int_to_ptr.vmem [resolvable:$true] %s377_s10 }
  0x9b   : > { %p3134_p4 = pnand %p2523_p7, %p45_p13  ;;  %s3140_s25 = scalar_lea.sflag [#allocation3], %s365_s24 }
  0x9c   : > { %s2753_s2 = scalar_lea.hbm %s3132_s18, 2048  ;;  %s2758_s17 = scalar_lea.hbm %s3792_s0, 4096 }
  0x9d   : > { %p2754_p10 = scmp.ne.s32.totalorder %s3132_s18, %s2753_s2  ;;  %p2755_p8 = pneg %p3134_p4 }
  0x9e   : > { %p2759_p11 = scmp.lt.u32.totalorder %s3132_s18, %s3792_s0  ;;  %p2760_p12 = scmp.lt.u32.totalorder %s2758_s17, %s2753_s2 }
  0x9f   : > { %p2756_p1 = pnand %p2755_p8, %p2754_p10  ;;  %p2762_p0 = scmp.lt.u32.totalorder %s2753_s2, %s3132_s18 }
  0xa0   : > { %p2761_p13 = por %p2760_p12, %p2759_p11 }
  0xa1   : > { %p2757_p3 = pneg %p2756_p1 }
  0xa2   : > { %p2763_p5 = por %p2762_p0, %p2761_p13 }
  0xa4   : > { %p2764_p7 = pnand %p2763_p5, %p2757_p3 }
  0xa6   : > { %2767 = shalt.err (!%p2764_p7)
}
  0xa7   : > { %s2768_s24 = scalar_lea.vmem %s3138_s10, 2048  ;;  %s2874_s28 = smov [#allocation2]  }
  0xa8   : > { %p2769_p10 = scmp.ne.s32.totalorder %s3138_s10, %s2768_s24  ;;  %s2773_s30 = sshll.u32 %s2874_s28, 4  ;;  %s2774_s30 = int_to_ptr.vmem [resolvable:$false] %s2773_s30 }
  0xa9   : > { %s2775_s21 = scalar_lea.vmem %s2774_s30, 4096  ;;  %p2776_p6 = scmp.lt.s32.totalorder %s3138_s10, %s2774_s30 }
  0xaa   : > { %p2771_p1 = pnand %p2769_p10, %p2755_p8  ;;  %p2777_p11 = scmp.lt.s32.totalorder %s2775_s21, %s2768_s24 }
  0xac   : > { %p2772_p9 = pneg %p2771_p1  ;;  %p2778_p12 = por %p2777_p11, %p2776_p6 }
  0xae   : > { %p2779_p13 = pnand %p2778_p12, %p2772_p9 }
  0xb0   : > { %2782 = shalt.err (!%p2779_p13)
}
  0xb1   : > { %2513 = dma.hbm_to_vmem [thread:$0]  (!%p3134_p4), %s3132_s18, 2048, %s3138_s10, %s3140_s25, %s3821_s22, %s3821_s22, %s3820_s26  }
  0xb2   : > { %p3827_p8 = scmp.ne.s32.totalorder %s3815_s20, 0 }
  0xb3   : > { %s3174_s2 = sand.u32 (!%p3827_p8), 1, %s2853_s14  }
  0xb4   : > { %389 = sbr.rel (%p3827_p8) target bundleno = 1091 (0x443), region = 60  ;;  %s2043_s17 = sshll.u32 (!%p3827_p8), %s3174_s2, 7 }
  0xb5   : > { %s392_s29 = scalar_lea.sflag (!%p3827_p8), [#allocation3], %s3174_s2  ;;  %s3178_s24 = scalar_lea.vmem (!%p3827_p8), [#allocation2], %s2043_s17 }
  0xbb   : > { %2828 = dma.done.wait (%p3114_p2), %s392_s29, 2048  }
  0xbc   : > { %2830 = vsyncadd (%p3114_p2), %s392_s29, 4294965248  ;;  %p3828_p6 = scmp.eq.s32.totalorder %s2956_s19, 0 }
  0xbe   : > { %2832 = dma.done.wait (%p3828_p6), [#allocation6], 6400   ;;  %p3829_p9 = pmov %p3828_p6 }
  0xbf   : > { %p3830_p4 = pmov %p3828_p6 }
  0xc0   : > { %2834 = vsyncadd (%p3829_p9), [#allocation6], 4294960896 }
  0xc1   : > { %2836 = dma.done.wait (%p3830_p4), [#allocation9], 6144   ;;  %p3831_p3 = pmov %p3830_p4 }
  0xc3   : > { %2838 = vsyncadd (%p3831_p3), [#allocation9], 4294961152  ;;  %p3832_p0 = pmov %p3831_p3 }
  0xc5   : > { %2840 = dma.done.wait (%p3832_p0), [#allocation12], 2048   ;;  %p3833_p5 = pmov %p3832_p0 }
  0xc6   : > { %v2875_v0 = vmov 0.0   ;;  %v568_v1 = vld [vmem:[#allocation7 + $0x8] sm:$0xff]  ;;  %v571_v2 = vld [vmem:[#allocation7 + $0x20] sm:$0xff]  ;;  %v570_v5 = vld [vmem:[#allocation7 + $0x18] sm:$0xff]  ;;  %v2876_v16 = vmov 0.0|0.0   ;;  %vm2877_vm0 = vmmov 0  }
  0xc7   : > { %2842 = vsyncadd (%p3833_p5), [#allocation12], 4294965248  ;;  %726 = vmatprep.mubr.f32.mxu0 %v2875_v0  ;;  %v567_v3 = vld [vmem:[#allocation7] sm:$0xff]  ;;  %v2302_v4 = vpack.c.bf16 %v571_v2, %v568_v1  ;;  %v574_v6 = vld [vmem:[#allocation7 + $0x38] sm:$0xff]  ;;  %2334 = vmatprep.subr.bf16.mxu1 %v2876_v16  ;;  %vm641_vm1 = vcmask 1041409   ;;  %vm644_vm2 = vcmask 1042434  }
  0xc8   : > { %v577_v7 = vld [vmem:[#allocation7 + $0x50] sm:$0xff]  ;;  %v2304_v8 = vpack.c.bf16 %v570_v5, %v567_v3  ;;  %v576_v11 = vld [vmem:[#allocation7 + $0x48] sm:$0xff]  ;;  %v583_v13 = vld [vmem:[#allocation7 + $0x80] sm:$0xff]  ;;  %2173 = vmatprep.mubr.msk.f32.mxu1 %vm2877_vm0, %v2875_v0  ;;  %vm647_vm3 = vcmask 1043459   ;;  %vm650_vm4 = vcmask 1044484   ;;  %vm653_vm5 = vcmask 1045509  }
  0xc9   : > { %v2306_v9 = vpack.c.bf16 %v577_v7, %v574_v6  ;;  %v573_v10 = vld [vmem:[#allocation7 + $0x30] sm:$0xff]  ;;  %v580_v12 = vld [vmem:[#allocation7 + $0x68] sm:$0xff]  ;;  %2303 = vmatprep.subr.bf16.mxu0 %v2302_v4  ;;  %v579_v15 = vld [vmem:[#allocation7 + $0x60] sm:$0xff]  ;;  %vm656_vm6 = vcmask 1046534   ;;  %vm659_vm7 = vcmask 1047559   ;;  %s2049_s23 = sshll.u32 %s3174_s2, 3 }
  0xca   : > { %2305 = vmatpush1.bf16.msra.mxu0 %v2304_v8  ;;  %v2308_v14 = vpack.c.bf16 %v576_v11, %v573_v10  ;;  %v2310_v17 = vpack.c.bf16 %v583_v13, %v580_v12  ;;  %v582_v18 = vld [vmem:[#allocation7 + $0x78] sm:$0xff]  ;;  %v589_v20 = vld [vmem:[#allocation7 + $0xb0] sm:$0xff]  ;;  %v588_v22 = vld [vmem:[#allocation7 + $0xa8] sm:$0xff]  ;;  %s3834_s30 = sld [smem:[#allocation21_spill]]  ;;  %s2053_s21 = sshll.u32 %s2956_s19, 7 }
  0xcb   : > { %2307 = vmatprep.subr.bf16.mxu0 %v2306_v9  ;;  %v586_v19 = vld [vmem:[#allocation7 + $0x98] sm:$0xff]  ;;  %v585_v21 = vld [vmem:[#allocation7 + $0x90] sm:$0xff]  ;;  %v592_v23 = vld [vmem:[#allocation7 + $0xc8] sm:$0xff]  ;;  %v2312_v29 = vpack.c.bf16 %v582_v18, %v579_v15  ;;  %s451_s17 = scalar_lea.vmem [#allocation13], %s2049_s23  ;;  %s3835_s26 = sld [smem:[#allocation22_spill]] }
  0xcc   : > { %v595_v24 = vld [vmem:[#allocation7 + $0xe0] sm:$0xff]  ;;  %v3202_v26 = vld [vmem:[#allocation7 + $0xd8] sm:$0xff]  ;;  %v3206_v28 = vld [vmem:[#allocation7 + $0x110] sm:$0xff]  ;;  %v2314_v33 = vpack.c.bf16 %v589_v20, %v586_v19  ;;  %v2316_v42 = vpack.c.bf16 %v588_v22, %v585_v21  ;;  %s1912_s29 = sshll.u32 %s451_s17, 4  ;;  %s1899_s27 = scalar_lea.sflag [#allocation4], %s3174_s2  ;;  %s3750_s29 = int_to_ptr.vmem [resolvable:$true] %s1912_s29 }
  0xcd   : > { %v3200_v25 = vld [vmem:[#allocation7 + $0xc0] sm:$0xff]  ;;  %v3204_v27 = vld [vmem:[#allocation7 + $0xf8] sm:$0xff]  ;;  %v3208_v30 = vld [vmem:[#allocation7 + $0xf0] sm:$0xff]  ;;  %v2318_v43 = vpack.c.bf16 %v595_v24, %v592_v23  ;;  %s2783_s18 = scalar_lea.vmem %s3750_s29, 128  ;;  %p3836_p7 = scmp.ne.s32.totalorder %s3824_s12, 0 }
  0xce   : > { %2309 = vmatpush1.bf16.msra.mxu0 %v2308_v14  ;;  %v3210_v31 = vld [vmem:[#allocation7 + $0x108] sm:$0xff]  ;;  %v3214_v34 = vld [vmem:[#allocation7 + $0x140] sm:$0xff]  ;;  %v3218_v36 = vld [vmem:[#allocation7 + $0x138] sm:$0xff]  ;;  %v2320_v47 = vpack.c.bf16 %v3202_v26, %v3200_v25  ;;  %v2322_v48 = vpack.c.bf16 %v3206_v28, %v3204_v27  ;;  %p2784_p2 = scmp.ne.s32.totalorder %s3750_s29, %s2783_s18  ;;  %s2879_s19 = smov [#allocation13]  }
  0xcf   : > { %v3212_v32 = vld [vmem:[#allocation7 + $0x128] sm:$0xff]  ;;  %2311 = vmatprep.subr.bf16.mxu0 %v2310_v17  ;;  %v3216_v35 = vld [vmem:[#allocation7 + $0x120] sm:$0xff]  ;;  %v3220_v37 = vld [vmem:[#allocation7 + $0x158] sm:$0xff]  ;;  %v2324_v54 = vpack.c.bf16 %v3210_v31, %v3208_v30  ;;  %s2787_s10 = sshll.u32 %s2879_s19, 4  ;;  %s2788_s10 = int_to_ptr.vmem [resolvable:$false] %s2787_s10 }
  0xd0   : > { %v3222_v38 = vld [vmem:[#allocation7 + $0x170] sm:$0xff]  ;;  %v3226_v40 = vld [vmem:[#allocation7 + $0x168] sm:$0xff]  ;;  %v3232_v44 = vld [vmem:[%s3178_s24 + $0x8] sm:$0xff]  ;;  %v2326_v55 = vpack.c.bf16 %v3214_v34, %v3212_v32  ;;  %v2328_v56 = vpack.c.bf16 %v3218_v36, %v3216_v35  ;;  %p2785_p10 = pnand %p2784_p2, %p3836_p7  ;;  %s2789_s23 = scalar_lea.vmem %s2788_s10, 256 }
  0xd1   : > { %v3224_v39 = vld [vmem:[#allocation7 + $0x150] sm:$0xff]  ;;  %v3235_v45 = vld [vmem:[%s3178_s24 + $0x10] sm:$0xff]  ;;  %v3238_v46 = vld [vmem:[%s3178_s24 + $0x18] sm:$0xff]  ;;  %v2330_v5 = vpack.c.bf16 %v3222_v38, %v3220_v37  ;;  %s3748_s22 = scalar_lea.hbm %s3835_s26, %s2053_s21  ;;  %p2790_p11 = scmp.lt.s32.totalorder %s3750_s29, %s2788_s10 }
  0xd2   : > { %v3229_v41 = vld [vmem:[%s3178_s24] sm:$0xff]  ;;  %2313 = vmatpush1.bf16.msra.mxu0 %v2312_v29  ;;  %v3248_v50 = vld [vmem:[%s3178_s24 + $0x28] sm:$0xff]  ;;  %v3251_v51 = vld [vmem:[%s3178_s24 + $0x30] sm:$0xff]  ;;  %v476_v53 = vadd.f32 %v3238_v46, %v3235_v45  ;;  %v2332_v6 = vpack.c.bf16 %v3226_v40, %v3224_v39  ;;  %p2786_p1 = pneg %p2785_p10  ;;  %p2791_p12 = scmp.lt.s32.totalorder %s2789_s23, %s2783_s18 }
  0xd3   : > { %v3245_v49 = vld [vmem:[%s3178_s24 + $0x20] sm:$0xff]  ;;  %v469_v52 = vadd.f32 %v3232_v44, %v3229_v41  ;;  %2315 = vmatprep.subr.bf16.mxu0 %v2314_v33  ;;  %v3264_v57 = vld [vmem:[%s3178_s24 + $0x38] sm:$0xff]  ;;  %v3270_v59 = vld [vmem:[%s3178_s24 + $0x48] sm:$0xff] }
  0xd4   : > { %v3267_v58 = vld [vmem:[%s3178_s24 + $0x40] sm:$0xff]  ;;  %v483_v60 = vadd.f32 %v3248_v50, %v3245_v49  ;;  %v3275_v61 = vld [vmem:[%s3178_s24 + $0x50] sm:$0xff]  ;;  %v3278_v62 = vld [vmem:[%s3178_s24 + $0x58] sm:$0xff]  ;;  %v477_v2 = vrot.slane %v476_v53, 4  ;;  %v490_v3 = vadd.f32 %v3264_v57, %v3251_v51  ;;  %p2792_p13 = por %p2791_p12, %p2790_p11 }
  0xd5   : > { %v3281_v63 = vld [vmem:[%s3178_s24 + $0x60] sm:$0xff]  ;;  %v470_v1 = vrot.slane %v469_v52, 4  ;;  %v497_v4 = vadd.f32 %v3270_v59, %v3267_v58  ;;  %v3292_v7 = vld [vmem:[%s3178_s24 + $0x68] sm:$0xff]  ;;  %v3295_v8 = vld [vmem:[%s3178_s24 + $0x70] sm:$0xff]  ;;  %v504_v11 = vadd.f32 %v3278_v62, %v3275_v61 }
  0xd6   : > { %v3298_v9 = vld [vmem:[%s3178_s24 + $0x78] sm:$0xff]  ;;  %v484_v10 = vrot.slane %v483_v60, 4  ;;  %2317 = vmatpush1.bf16.msra.mxu0 %v2316_v42  ;;  %v478_v13 = vadd.f32 %v477_v2, %v476_v53  ;;  %v491_v14 = vrot.slane %v490_v3, 4  ;;  %v511_v19 = vadd.f32 %v3292_v7, %v3281_v63  ;;  %p2793_p8 = pnand %p2792_p13, %p2786_p1 }
  0xd7   : > { %v471_v12 = vadd.f32 %v470_v1, %v469_v52  ;;  %v498_v15 = vrot.slane %v497_v4, 4  ;;  %2319 = vmatprep.subr.bf16.mxu0 %v2318_v43  ;;  %v505_v18 = vrot.slane %v504_v11, 4  ;;  %v518_v20 = vadd.f32 %v3298_v9, %v3295_v8 }
  0xd8   : > { %v485_v17 = vadd.f32 %v484_v10, %v483_v60  ;;  %v479_v22 = vrot.slane %v478_v13, 2  ;;  %v492_v23 = vadd.f32 %v491_v14, %v490_v3  ;;  %v512_v27 = vrot.slane %v511_v19, 4 }
  0xd9   : > { %v472_v21 = vrot.slane %v471_v12, 2  ;;  %v499_v24 = vadd.f32 %v498_v15, %v497_v4  ;;  %v506_v26 = vadd.f32 %v505_v18, %v504_v11  ;;  %v519_v28 = vrot.slane %v518_v20, 4 }
  0xda   : > { %v486_v25 = vrot.slane %v485_v17, 2  ;;  %2321 = vmatpush1.bf16.msra.mxu0 %v2320_v47  ;;  %v480_v30 = vadd.f32 %v479_v22, %v478_v13  ;;  %v493_v31 = vrot.slane %v492_v23, 2  ;;  %v513_v52 = vadd.f32 %v512_v27, %v511_v19 }
  0xdb   : > { %v473_v29 = vadd.f32 %v472_v21, %v471_v12  ;;  %v500_v33 = vrot.slane %v499_v24, 2  ;;  %2323 = vmatprep.subr.bf16.mxu0 %v2322_v48  ;;  %v507_v43 = vrot.slane %v506_v26, 2  ;;  %v520_v53 = vadd.f32 %v519_v28, %v518_v20  ;;  %v2050_v20 = vld [vmem:[%s3793_s1] ss:$0 sm:$0xff]  ;;  %v804_v28 = vld [vmem:[#allocation8 + $0x8] sm:$0xff] }
  0xdc   : > { %v487_v42 = vadd.f32 %v486_v25, %v485_v17  ;;  %v481_v1 = vrot.slane %v480_v30, 1  ;;  %v494_v2 = vadd.f32 %v493_v31, %v492_v23  ;;  %v514_v11 = vrot.slane %v513_v52, 2 }
  0xdd   : > { %v474_v60 = vrot.slane %v473_v29, 1  ;;  %v501_v3 = vadd.f32 %v500_v33, %v499_v24  ;;  %v508_v10 = vadd.f32 %v507_v43, %v506_v26  ;;  %v521_v14 = vrot.slane %v520_v53, 2 }
  0xde   : > { %v488_v4 = vrot.slane %v487_v42, 1  ;;  %2325 = vmatpush1.bf16.msra.mxu0 %v2324_v54  ;;  %v482_v12 = vadd.f32 %v481_v1, %v480_v30  ;;  %v495_v13 = vrot.slane %v494_v2, 1  ;;  %v515_v18 = vadd.f32 %v514_v11, %v513_v52 }
  0xdf   : > { %v475_v47 = vadd.f32 %v474_v60, %v473_v29  ;;  %v502_v48 = vrot.slane %v501_v3, 1  ;;  %2327 = vmatprep.subr.bf16.mxu0 %v2326_v55  ;;  %v509_v17 = vrot.slane %v508_v10, 1  ;;  %v522_v19 = vadd.f32 %v521_v14, %v520_v53  ;;  %v806_v29 = vld [vmem:[#allocation8 + $0x18] sm:$0xff]  ;;  %v803_v14 = vld [vmem:[#allocation8] sm:$0xff] }
  0xe0   : > { %v489_v15 = vadd.f32 %v488_v4, %v487_v42  ;;  %v496_v21 = vadd.f32 %v495_v13, %v494_v2  ;;  %v527_v23 = vmul.f32 0.0625, %v482_v12  ;;  %v516_v25 = vrot.slane %v515_v18, 1  ;;  %v808_v13 = vld [vmem:[#allocation8 + $0x28] sm:$0xff] }
  0xe1   : > { %v503_v22 = vadd.f32 %v502_v48, %v501_v3  ;;  %v526_v54 = vmul.f32 0.0625, %v475_v47  ;;  %v510_v24 = vadd.f32 %v509_v17, %v508_v10  ;;  %v523_v26 = vrot.slane %v522_v19, 1  ;;  %v805_v47 = vld [vmem:[#allocation8 + $0x10] sm:$0xff]  ;;  %v810_v48 = vld [vmem:[#allocation8 + $0x38] sm:$0xff] }
  0xe2   : > { %v528_v27 = vmul.f32 0.0625, %v489_v15  ;;  %2329 = vmatpush1.bf16.msra.mxu0 %v2328_v56  ;;  %v529_v32 = vmul.f32 0.0625, %v496_v21  ;;  %v542_v30 = vadd.f32 %v2050_v20, %v527_v23  ;;  %v517_v31 = vadd.f32 %v516_v25, %v515_v18  ;;  %v809_v21 = vld [vmem:[#allocation8 + $0x30] sm:$0xff]  ;;  %v814_v23 = vld [vmem:[#allocation8 + $0x58] sm:$0xff] }
  0xe3   : > { %v530_v34 = vmul.f32 0.0625, %v503_v22  ;;  %v541_v55 = vadd.f32 %v2050_v20, %v526_v54  ;;  %2331 = vmatprep.subr.bf16.mxu0 %v2330_v5  ;;  %v524_v33 = vadd.f32 %v523_v26, %v522_v19  ;;  %v531_v42 = vmul.f32 0.0625, %v510_v24  ;;  %v812_v54 = vld [vmem:[#allocation8 + $0x48] sm:$0xff]  ;;  %v569_v25 = vld [vmem:[#allocation7 + $0x10] sm:$0xff] }
  0xe4   : > { %v543_v43 = vadd.f32 %v2050_v20, %v528_v27  ;;  %v544_v52 = vadd.f32 %v2050_v20, %v529_v32  ;;  %v640_v60 = vrot.slane %v542_v30, 7  ;;  %v2358_v1 = vpack.c.bf16 %v806_v29, %v804_v28  ;;  %v572_v26 = vld [vmem:[#allocation7 + $0x28] sm:$0xff]  ;;  %v811_v28 = vld [vmem:[#allocation8 + $0x40] sm:$0xff]  ;;  %v813_v29 = vld [vmem:[#allocation8 + $0x50] sm:$0xff] }
  0xe5   : > { %v545_v53 = vadd.f32 %v2050_v20, %v530_v34  ;;  %v532_v2 = vmul.f32 0.0625, %v517_v31  ;;  %v533_v3 = vmul.f32 0.0625, %v524_v33  ;;  %v546_v35 = vadd.f32 %v2050_v20, %v531_v42  ;;  %v816_v32 = vld [vmem:[#allocation8 + $0x68] sm:$0xff]  ;;  %v818_v34 = vld [vmem:[#allocation8 + $0x78] sm:$0xff] }
  0xe6   : > { %v643_v36 = vrot.slane %v543_v43, 6  ;;  %2333 = vmatpush1.bf16.msra.mxu0 %v2332_v6  ;;  %v642_v56 = vsel %vm641_vm1, %v640_v60, %v541_v55  ;;  %v646_v37 = vrot.slane %v544_v52, 5  ;;  %v2360_v17 = vpack.c.bf16 %v805_v47, %v803_v14  ;;  %v575_v55 = vld [vmem:[#allocation7 + $0x40] sm:$0xff]  ;;  %v578_v30 = vld [vmem:[#allocation7 + $0x58] sm:$0xff]  ;;  %v817_v52 = vld [vmem:[#allocation8 + $0x70] sm:$0xff] }
  0xe7   : > { %v649_v38 = vrot.slane %v545_v53, 4  ;;  %v547_v5 = vadd.f32 %v2050_v20, %v532_v2  ;;  %v548_v4 = vadd.f32 %v2050_v20, %v533_v3  ;;  %v652_v11 = vrot.slane %v546_v35, 3  ;;  %2359 = vmatprep.subr.bf16.mxu0 %v2358_v1  ;;  %v807_v20 = vld [vmem:[#allocation8 + $0x20] sm:$0xff]  ;;  %v820_v53 = vld [vmem:[#allocation8 + $0x88] sm:$0xff]  ;;  %v822_v1 = vld [vmem:[#allocation8 + $0x98] sm:$0xff] }
  0xe8   : > { %v645_v10 = vsel %vm644_vm2, %v643_v36, %v642_v56  ;;  %v2362_v19 = vpack.c.bf16 %v810_v48, %v808_v13  ;;  %v2364_v24 = vpack.c.bf16 %v809_v21, %v807_v20  ;;  %v2366_v27 = vpack.c.bf16 %v814_v23, %v812_v54  ;;  %v815_v43 = vld [vmem:[#allocation8 + $0x60] sm:$0xff]  ;;  %v581_v2 = vld [vmem:[#allocation7 + $0x70] sm:$0xff]  ;;  %v584_v3 = vld [vmem:[#allocation7 + $0x88] sm:$0xff] }
  0xe9   : > { %v648_v12 = vsel %vm647_vm3, %v646_v37, %v645_v10  ;;  %v655_v40 = vrot.slane %v547_v5, 2  ;;  %v658_v6 = vrot.slane %v548_v4, 1  ;;  %v2335_v31 = vpack.c.bf16 %v572_v26, %v569_v25  ;;  %v819_v56 = vld [vmem:[#allocation8 + $0x80] sm:$0xff]  ;;  %v821_v37 = vld [vmem:[#allocation8 + $0x90] sm:$0xff]  ;;  %v826_v4 = vld [vmem:[#allocation8 + $0xb8] sm:$0xff] }
  0xea   : > { %v651_v39 = vsel %vm650_vm4, %v649_v38, %v648_v12  ;;  %v2368_v33 = vpack.c.bf16 %v813_v29, %v811_v28  ;;  %v2370_v42 = vpack.c.bf16 %v818_v34, %v816_v32  ;;  %v2338_v60 = vpack.c.bf16 %v578_v30, %v575_v55  ;;  %v824_v38 = vld [vmem:[#allocation8 + $0xa8] sm:$0xff]  ;;  %v587_v10 = vld [vmem:[#allocation7 + $0xa0] sm:$0xff]  ;;  %v825_v13 = vld [vmem:[#allocation8 + $0xb0] sm:$0xff] }
  0xeb   : > { %v654_v15 = vsel %vm653_vm5, %v652_v11, %v651_v39  ;;  %2336 = vmatpush3.bf16.msra.mxu1 %v2335_v31  ;;  %v2372_v35 = vpack.c.bf16 %v817_v52, %v815_v43  ;;  %v2374_v36 = vpack.c.bf16 %v822_v1, %v820_v53  ;;  %v2341_v5 = vpack.c.bf16 %v584_v3, %v581_v2  ;;  %v590_v11 = vld [vmem:[#allocation7 + $0xb8] sm:$0xff]  ;;  %v823_v12 = vld [vmem:[#allocation8 + $0xa0] sm:$0xff]  ;;  %v828_v48 = vld [vmem:[#allocation8 + $0xc8] sm:$0xff] }
  0xec   : > { %v657_v18 = vsel %vm656_vm6, %v655_v40, %v654_v15  ;;  %2337 = vmatprep.subr.bf16.mxu1 %v2876_v16  ;;  %v2376_v14 = vpack.c.bf16 %v821_v37, %v819_v56  ;;  %v2378_v47 = vpack.c.bf16 %v826_v4, %v824_v38  ;;  %v2344_v39 = vpack.c.bf16 %v590_v11, %v587_v10  ;;  %v830_v40 = vld [vmem:[#allocation8 + $0xd8] sm:$0xff]  ;;  %v596_v15 = vld [vmem:[#allocation7 + $0xe8] sm:$0xff]  ;;  %v829_v20 = vld [vmem:[#allocation8 + $0xd0] sm:$0xff] }
  0xed   : > { %v3328_v22 = vsel %vm659_vm7, %v658_v6, %v657_v18  ;;  %v593_v6 = vld [vmem:[#allocation7 + $0xd0] sm:$0xff]  ;;  %v2382_v18 = vpack.c.bf16 %v830_v40, %v828_v48  ;;  %v832_v21 = vld [vmem:[#allocation8 + $0xe8] sm:$0xff]  ;;  %v834_v23 = vld [vmem:[#allocation8 + $0xf8] sm:$0xff] }
  0xee   : > { %727 = vmatmul.mubr.f32.vlgmr.msra.gmra.mrb[0].mxu0 %v3328_v22  ;;  %v2347_v54 = vpack.c.bf16 %v596_v15, %v593_v6  ;;  %v602_v25 = vld [vmem:[#allocation7 + $0x118] sm:$0xff]  ;;  %v831_v28 = vld [vmem:[#allocation8 + $0xe0] sm:$0xff]  ;;  %v833_v29 = vld [vmem:[#allocation8 + $0xf0] sm:$0xff] }
  0xef   : > { %2361 = vmatpush1.bf16.msra.mxu0 %v2360_v17  ;;  %911 = vmatprep.mubr.f32.mxu0 %v2875_v0  ;;  %v2380_v17 = vpack.c.bf16 %v825_v13, %v823_v12  ;;  %v605_v34 = vld [vmem:[#allocation7 + $0x130] sm:$0xff]  ;;  %v608_v55 = vld [vmem:[#allocation7 + $0x148] sm:$0xff]  ;;  %v2388_v30 = vpack.c.bf16 %v833_v29, %v831_v28  ;;  %v614_v43 = vld [vmem:[#allocation7 + $0x178] sm:$0xff] }
  0xf0   : > { %2363 = vmatprep.subr.bf16.mxu0 %v2362_v19  ;;  %2339 = vmatpush3.bf16.msra.mxu1 %v2338_v60  ;;  %v827_v19 = vld [vmem:[#allocation8 + $0xc0] sm:$0xff]  ;;  %v3337_v31 = vld [vmem:[#allocation5] sm:$0xff]  ;;  %v3342_v53 = vld [vmem:[#allocation5 + $0x8] sm:$0xff] }
  0xf1   : > { %2340 = vmatprep.subr.bf16.mxu1 %v2876_v16  ;;  %v2384_v26 = vpack.c.bf16 %v829_v20, %v827_v19  ;;  %v551_v52 = vadd.f32 %v3337_v31, %v3229_v41  ;;  %v1009_v1 = vld [vmem:[#allocation11] sm:$0xff]  ;;  %v1010_v2 = vld [vmem:[#allocation11 + $0x8] sm:$0xff]  ;;  %v552_v3 = vadd.f32 %v3342_v53, %v3232_v44  ;;  %v1011_v41 = vld [vmem:[#allocation11 + $0x10] sm:$0xff]  ;;  %v553_v56 = vadd.f32 %v3337_v31, %v3235_v45 }
  0xf2   : > { %v1013_v37 = vld [vmem:[#allocation11 + $0x20] sm:$0xff]  ;;  %v1014_v38 = vld [vmem:[#allocation11 + $0x28] sm:$0xff]  ;;  %v1016_v4 = vld [vmem:[#allocation11 + $0x38] sm:$0xff]  ;;  %v555_v10 = vadd.f32 %v3337_v31, %v3245_v49  ;;  %v557_v48 = vadd.f32 %v3337_v31, %v3251_v51  ;;  %v559_v51 = vadd.f32 %v3337_v31, %v3267_v58  ;;  %v560_v40 = vadd.f32 %v3342_v53, %v3270_v59 }
  0xf3   : > { %2365 = vmatpush1.bf16.msra.mxu0 %v2364_v24  ;;  %v599_v24 = vld [vmem:[#allocation7 + $0x100] sm:$0xff]  ;;  %v3366_v45 = vpack.c.bf16 %v1014_v38, %v1013_v37  ;;  %v1019_v49 = vld [vmem:[#allocation11 + $0x50] sm:$0xff]  ;;  %v1020_v13 = vld [vmem:[#allocation11 + $0x58] sm:$0xff]  ;;  %v562_v6 = vadd.f32 %v3342_v53, %v3278_v62  ;;  %v563_v58 = vadd.f32 %v3337_v31, %v3281_v63  ;;  %v564_v59 = vadd.f32 %v3342_v53, %v3292_v7 }
  0xf4   : > { %2367 = vmatprep.subr.bf16.mxu0 %v2366_v27  ;;  %2342 = vmatpush3.bf16.msra.mxu1 %v2341_v5  ;;  %v2386_v27 = vpack.c.bf16 %v834_v23, %v832_v21  ;;  %v2350_v32 = vpack.c.bf16 %v602_v25, %v599_v24  ;;  %v554_v5 = vadd.f32 %v3342_v53, %v3238_v46  ;;  %v1017_v46 = vld [vmem:[#allocation11 + $0x40] sm:$0xff]  ;;  %v1023_v63 = vld [vmem:[#allocation11 + $0x70] sm:$0xff]  ;;  %v1024_v19 = vld [vmem:[#allocation11 + $0x78] sm:$0xff] }
  0xf5   : > { %2343 = vmatprep.subr.bf16.mxu1 %v2876_v16  ;;  %v1021_v15 = vld [vmem:[#allocation11 + $0x60] sm:$0xff]  ;;  %v565_v62 = vadd.f32 %v3337_v31, %v3295_v8  ;;  %v2412_v7 = vpack.c.bf16 %v1024_v19, %v1023_v63  ;;  %v566_v21 = vadd.f32 %v3342_v53, %v3298_v9  ;;  %v3437_v9 = vld [vmem:[%s3798_s6] sm:$0x7] }
  0xf7   : > { %2369 = vmatpush1.bf16.msra.mxu0 %v2368_v33  ;;  %v2353_v33 = vpack.c.bf16 %v608_v55, %v605_v34  ;;  %v2878_v55 = vmov 1966171168  }
  0xf8   : > { %2371 = vmatprep.subr.bf16.mxu0 %v2370_v42  ;;  %2345 = vmatpush3.bf16.msra.mxu1 %v2344_v39  ;;  %v611_v42 = vld [vmem:[#allocation7 + $0x160] sm:$0xff]  ;;  %v3387_v39 = vpack.c.bf16 %v1020_v13, %v1019_v49 }
  0xf9   : > { %2346 = vmatprep.subr.bf16.mxu1 %v2876_v16  ;;  %v2356_v60 = vpack.c.bf16 %v614_v43, %v611_v42 }
  0xfb   : > { %2373 = vmatpush1.bf16.msra.mxu0 %v2372_v35  ;;  %v3349_v35 = vpack.c.bf16 %v1010_v2, %v1009_v1 }
  0xfc   : > { %2375 = vmatprep.subr.bf16.mxu0 %v2374_v36  ;;  %2348 = vmatpush3.bf16.msra.mxu1 %v2347_v54  ;;  %v1012_v36 = vld [vmem:[#allocation11 + $0x18] sm:$0xff]  ;;  %v835_v54 = vld [vmem:[%s3799_s7] sm:$0x3] }
  0xfd   : > { %2349 = vmatprep.subr.bf16.mxu1 %v2876_v16  ;;  %v3357_v44 = vpack.c.bf16 %v1012_v36, %v1011_v41 }
  0xff   : > { %2377 = vmatpush1.bf16.msra.mxu0 %v2376_v14  ;;  %v1018_v14 = vld [vmem:[#allocation11 + $0x48] sm:$0xff] }
 0x100   : > { %2379 = vmatprep.subr.bf16.mxu0 %v2378_v47  ;;  %2351 = vmatpush3.bf16.msra.mxu1 %v2350_v32  ;;  %v556_v47 = vadd.f32 %v3342_v53, %v3248_v50  ;;  %v3380_v12 = vpack.c.bf16 %v1018_v14, %v1017_v46  ;;  %v558_v50 = vadd.f32 %v3342_v53, %v3264_v57 }
 0x101   : > { %2352 = vmatprep.subr.bf16.mxu1 %v2876_v16  ;;  %v561_v57 = vadd.f32 %v3337_v31, %v3275_v61  ;;  %v1022_v61 = vld [vmem:[#allocation11 + $0x68] sm:$0xff] }
 0x103   : > { %2381 = vmatpush1.bf16.msra.mxu0 %v2380_v17  ;;  %v617_v17 = vlaneseq }
 0x104   : > { %2383 = vmatprep.subr.bf16.mxu0 %v2382_v18  ;;  %2354 = vmatpush3.bf16.msra.mxu1 %v2353_v33  ;;  %v2409_v18 = vpack.c.bf16 %v1022_v61, %v1021_v15 }
 0x105   : > { %2355 = vmatprep.subr.bf16.mxu1 %v2876_v16  ;;  %v3417_v20 = vshrl.u32 %v617_v17, 7 }
 0x107   : > { %2385 = vmatpush1.bf16.msra.mxu0 %v2384_v26  ;;  %v623_v8 = vsub.s32 1, %v3417_v20  ;;  %v3432_v24 = vsub.s32 0, %v3417_v20 }
 0x108   : > { %2387 = vmatprep.subr.bf16.mxu0 %v2386_v27  ;;  %2357 = vmatpush3.bf16.msra.mxu1 %v2356_v60 }
 0x109   : > { %2390 = vmatprep.subr.bf16.mxu1 %v2876_v16  ;;  %v3427_v23 = vrot.slane %v835_v54, %v623_v8  ;;  %v620_v25 = vrot.slane %v3437_v9, %v3432_v24  ;;  %v624_v26 = vrot.slane %v3437_v9, %v623_v8  ;;  %v3462_v43 = vrot.slane %v835_v54, %v3432_v24 }
 0x10b   : > { %2389 = vmatpush1.bf16.msra.mxu0 %v2388_v30  ;;  %2174 = vmatmul.mubr.f32.vlgmr.msra.gmra.mrb[0].mxu1 %v3328_v22  ;;  %v1015_v22 = vld [vmem:[#allocation11 + $0x30] sm:$0xff]  ;;  %v1099_v30 = vunpack.c.l.s4 %v2878_v55 }
 0x10c   : > { %2446 = vmatprep.subr.bf16.mxu0 %v2876_v16  ;;  %2392 = vmatpush3.bf16.msra.mxu1 %v3349_v35  ;;  %v3373_v11 = vpack.c.bf16 %v1016_v4, %v1015_v22 }
 0x10d   : > { %2208 = vmatprep.mubr.msk.f32.mxu1 %vm2877_vm0, %v2875_v0  ;;  %2393 = vmatprep.subr.bf16.mxu1 %v2876_v16  ;;  %v1100_v31 = vunpack.c.0.s8 %v1099_v30 }
 0x10e   : > { %912 = vmatmul.mubr.f32.vlgmr.msra.gmra.mrb[2].mxu0 %v551_v52 }
 0x10f   : > { %917 = vmatprep.mubr.f32.mxu0 %v2875_v0  ;;  %v3453_v33 = vsub.s32 %v1100_v31, %v3417_v20 }
 0x110   : > { %2395 = vmatpush3.bf16.msra.mxu1 %v3357_v44 }
 0x111   : > { %2396 = vmatprep.subr.bf16.mxu1 %v2876_v16 }
 0x112   : > { %918 = vmatmul.mubr.f32.gmra.mrb[4].mxu0 %v552_v3 }
 0x113   : > { %923 = vmatprep.mubr.f32.mxu0 %v2875_v0 }
 0x114   : > { %2398 = vmatpush3.bf16.msra.mxu1 %v3366_v45 }
 0x115   : > { %2399 = vmatprep.subr.bf16.mxu1 %v2876_v16 }
 0x116   : > { %924 = vmatmul.mubr.f32.gmra.mrb[6].mxu0 %v553_v56 }
 0x117   : > { %929 = vmatprep.mubr.f32.mxu0 %v2875_v0 }
 0x118   : > { %2401 = vmatpush3.bf16.msra.mxu1 %v3373_v11 }
 0x119   : > { %2402 = vmatprep.subr.bf16.mxu1 %v2876_v16 }
 0x11a   : > { %930 = vmatmul.mubr.f32.gmra.mrb[8].mxu0 %v554_v5 }
 0x11b   : > { %935 = vmatprep.mubr.f32.mxu0 %v2875_v0 }
 0x11c   : > { %2404 = vmatpush3.bf16.msra.mxu1 %v3380_v12 }
 0x11d   : > { %2405 = vmatprep.subr.bf16.mxu1 %v2876_v16 }
 0x11e   : > { %936 = vmatmul.mubr.f32.gmra.mrb[10].mxu0 %v555_v10 }
 0x11f   : > { %941 = vmatprep.mubr.f32.mxu0 %v2875_v0 }
 0x120   : > { %2407 = vmatpush3.bf16.msra.mxu1 %v3387_v39 }
 0x121   : > { %2408 = vmatprep.subr.bf16.mxu1 %v2876_v16 }
 0x122   : > { %942 = vmatmul.mubr.f32.gmra.mrb[12].mxu0 %v556_v47 }
 0x123   : > { %947 = vmatprep.mubr.f32.mxu0 %v2875_v0 }
 0x124   : > { %2410 = vmatpush3.bf16.msra.mxu1 %v2409_v18 }
 0x125   : > { %2411 = vmatprep.subr.bf16.mxu1 %v2876_v16 }
 0x126   : > { %948 = vmatmul.mubr.f32.gmra.mrb[14].mxu0 %v557_v48 }
 0x127   : > { %953 = vmatprep.mubr.f32.mxu0 %v2875_v0 }
 0x128   : > { %2413 = vmatpush3.bf16.msra.mxu1 %v2412_v7 }
 0x129   : > { %2415 = vmatprep.subr.bf16.mxu1 %v3349_v35 }
 0x12a   : > { %954 = vmatmul.mubr.f32.gmra.mrb[16].mxu0 %v558_v50 }
 0x12b   : > { %959 = vmatprep.mubr.f32.mxu0 %v2875_v0 }
 0x12e   : > { %960 = vmatmul.mubr.f32.gmra.mrb[18].mxu0 %v559_v51 }
 0x12f   : > { %965 = vmatprep.mubr.f32.mxu0 %v2875_v0 }
 0x132   : > { %966 = vmatmul.mubr.f32.gmra.mrb[20].mxu0 %v560_v40 }
 0x133   : > { %971 = vmatprep.mubr.f32.mxu0 %v2875_v0 }
 0x136   : > { %972 = vmatmul.mubr.f32.gmra.mrb[22].mxu0 %v561_v57 }
 0x137   : > { %977 = vmatprep.mubr.f32.mxu0 %v2875_v0 }
 0x13a   : > { %978 = vmatmul.mubr.f32.gmra.mrb[24].mxu0 %v562_v6 }
 0x13b   : > { %983 = vmatprep.mubr.f32.mxu0 %v2875_v0 }
 0x13e   : > { %984 = vmatmul.mubr.f32.gmra.mrb[26].mxu0 %v563_v58 }
 0x13f   : > { %989 = vmatprep.mubr.f32.mxu0 %v2875_v0 }
 0x142   : > { %990 = vmatmul.mubr.f32.gmra.mrb[28].mxu0 %v564_v59 }
 0x143   : > { %995 = vmatprep.mubr.f32.mxu0 %v2875_v0 }
 0x146   : > { %996 = vmatmul.mubr.f32.gmra.mrb[30].mxu0 %v565_v62 }
 0x147   : > { %1001 = vmatprep.mubr.f32.mxu0 %v2875_v0 }
 0x14a   : > { %1002 = vmatmul.mubr.f32.gmra.mrb[32].mxu0 %v566_v21 }
 0x14b   : > { %2299 = vmatprep.mubr.msk.f32.mxu0 %vm2877_vm0, %v2875_v0 }
 0x1c1   : > { %v728_v27 = vpop.f32.mrb[0].mxu0 }
 0x1c2   : > { %v729_v28 = vadd.f32 %v728_v27, %v620_v25  ;;  %v730_v29 = vpop.f32.mrb[1].mxu0 }
 0x1c3   : > { %v731_v32 = vadd.f32 %v730_v29, %v624_v26 }
 0x1c4   : > { %v3442_v34 = vmul.f32 0.25, %v729_v28 }
 0x1c6   : > { %v1025_v0 = vmul.f32 %v3442_v34, %v731_v32  ;;  %v1104_v42 = vrot.slane %v3442_v34, %v3453_v33  ;;  %v1097_v61 = vcombine.high %v3442_v34, %v3442_v34 }
 0x1c8   : > { %2209 = vmatmul.mubr.f32.vlgmr.msra.gmra.mrb[2].mxu1 %v1025_v0  ;;  %v1120_v52 = vrot.slane %v1104_v42, %v3453_v33  ;;  %v1112_v60 = vcombine.high %v1104_v42, %v1104_v42  ;;  %v1111_v21 = vrot.slane %v1097_v61, %v3453_v33 }
 0x1c9   : > { %2417 = vmatpush3.bf16.msra.mxu1 %v3349_v35 }
 0x1ca   : > { %2419 = vmatprep.subr.bf16.mxu1 %v3357_v44  ;;  %v1149_v2 = vrot.slane %v1120_v52, %v3432_v24  ;;  %v1134_v37 = vrot.slane %v1112_v60, %v3453_v33  ;;  %v1142_v48 = vcombine.high %v1120_v52, %v1120_v52  ;;  %v1127_v34 = vrot.slane %v1111_v21, %v3453_v33 }
 0x1cc   : > { %v1157_v57 = vrot.slane %v1142_v48, %v3432_v24  ;;  %v1144_v62 = vcombine.high %v1134_v37, %v1134_v37  ;;  %v1165_v42 = vrot.slane %v1127_v34, %v3432_v24 }
 0x1cd   : > { %2421 = vmatpush3.bf16.msra.mxu1 %v3357_v44 }
 0x1ce   : > { %2423 = vmatprep.subr.bf16.mxu1 %v3366_v45  ;;  %v1161_v54 = vrot.slane %v1144_v62, %v3432_v24 }
 0x1d1   : > { %2425 = vmatpush3.bf16.msra.mxu1 %v3366_v45 }
 0x1d2   : > { %2427 = vmatprep.subr.bf16.mxu1 %v3373_v11 }
 0x1d5   : > { %2429 = vmatpush3.bf16.msra.mxu1 %v3373_v11  ;;  %v1153_v11 = vrot.slane %v1134_v37, %v3432_v24 }
 0x1d6   : > { %2431 = vmatprep.subr.bf16.mxu1 %v3380_v12 }
 0x1d9   : > { %2433 = vmatpush3.bf16.msra.mxu1 %v3380_v12 }
 0x1da   : > { %2435 = vmatprep.subr.bf16.mxu1 %v3387_v39 }
 0x1dd   : > { %2437 = vmatpush3.bf16.msra.mxu1 %v3387_v39 }
 0x1de   : > { %2439 = vmatprep.subr.bf16.mxu1 %v2409_v18  ;;  %v3472_v38 = vpop.f32.mrb[0].mxu1 }
 0x1df   : > { %v2175_v45 = vpop.f32.mrb[1].mxu1 }
 0x1e1   : > { %v913_v53 = vpop.f32.mrb[2].mxu0  ;;  %2441 = vmatpush3.bf16.msra.mxu1 %v2409_v18 }
 0x1e2   : > { %v914_v1 = vadd.f32 %v913_v53, %v3462_v43  ;;  %v915_v3 = vpop.f32.mrb[3].mxu0  ;;  %2443 = vmatprep.subr.bf16.mxu1 %v2412_v7  ;;  %v1113_v53 = vcombine.high %v1111_v21, %v1111_v21 }
 0x1e3   : > { %v3468_v35 = vadd.f32 %v915_v3, %v3427_v23 }
 0x1e4   : > { %v1186_v41 = vmul.f32 %v1149_v2, %v914_v1 }
 0x1e5   : > { %v919_v36 = vpop.f32.mrb[4].mxu0  ;;  %2445 = vmatpush3.bf16.msra.mxu1 %v2412_v7 }
 0x1e6   : > { %v920_v56 = vadd.f32 %v919_v36, %v3462_v43  ;;  %v921_v44 = vpop.f32.mrb[5].mxu0  ;;  %2243 = vmatprep.mubr.f32.mxu1 %v1186_v41  ;;  %v1141_v36 = vrot.slane %v1113_v53, %v3453_v33 }
 0x1e7   : > { %v3475_v5 = vadd.f32 %v921_v44, %v3427_v23 }
 0x1e8   : > { %v1187_v22 = vmul.f32 %v1149_v2, %v920_v56 }
 0x1e9   : > { %v925_v4 = vpop.f32.mrb[6].mxu0 }
 0x1ea   : > { %v926_v10 = vadd.f32 %v925_v4, %v3462_v43  ;;  %v927_v46 = vpop.f32.mrb[7].mxu0  ;;  %2244 = vmatmul.mubr.f32.vlgmr.msra.gmra.mrb[4].mxu1 %v1187_v22  ;;  %v1169_v22 = vrot.slane %v1141_v36, %v3432_v24 }
 0x1eb   : > { %v3480_v14 = vadd.f32 %v927_v46, %v3427_v23 }
 0x1ec   : > { %v1188_v47 = vmul.f32 %v1153_v11, %v926_v10 }
 0x1ed   : > { %v931_v12 = vpop.f32.mrb[8].mxu0 }
 0x1ee   : > { %v932_v49 = vadd.f32 %v931_v12, %v3462_v43  ;;  %v933_v13 = vpop.f32.mrb[9].mxu0  ;;  %2246 = vmatprep.mubr.f32.mxu1 %v1188_v47 }
 0x1ef   : > { %v3484_v39 = vadd.f32 %v933_v13, %v3427_v23 }
 0x1f0   : > { %v1189_v50 = vmul.f32 %v1153_v11, %v932_v49  ;;  %v1143_v49 = vcombine.high %v1127_v34, %v1127_v34 }
 0x1f1   : > { %v937_v51 = vpop.f32.mrb[10].mxu0 }
 0x1f2   : > { %v938_v40 = vadd.f32 %v937_v51, %v3462_v43  ;;  %v939_v6 = vpop.f32.mrb[11].mxu0  ;;  %2247 = vmatmul.mubr.f32.gmra.mrb[6].mxu1 %v1189_v50 }
 0x1f3   : > { %v3489_v58 = vadd.f32 %v939_v6, %v3427_v23 }
 0x1f4   : > { %v1190_v59 = vmul.f32 %v1157_v57, %v938_v40  ;;  %v1173_v40 = vrot.slane %v1143_v49, %v3432_v24 }
 0x1f5   : > { %v943_v15 = vpop.f32.mrb[12].mxu0 }
 0x1f6   : > { %v944_v17 = vadd.f32 %v943_v15, %v3462_v43  ;;  %v945_v18 = vpop.f32.mrb[13].mxu0  ;;  %2249 = vmatprep.mubr.f32.mxu1 %v1190_v59 }
 0x1f7   : > { %v3495_v63 = vadd.f32 %v945_v18, %v3427_v23  ;;  %v1145_v18 = vcombine.high %v1141_v36, %v1141_v36 }
 0x1f8   : > { %v1191_v19 = vmul.f32 %v1157_v57, %v944_v17 }
 0x1f9   : > { %v949_v7 = vpop.f32.mrb[14].mxu0 }
 0x1fa   : > { %v950_v8 = vadd.f32 %v949_v7, %v3462_v43  ;;  %v951_v25 = vpop.f32.mrb[15].mxu0  ;;  %2250 = vmatmul.mubr.f32.gmra.mrb[8].mxu1 %v1191_v19 }
 0x1fb   : > { %v3501_v26 = vadd.f32 %v951_v25, %v3427_v23 }
 0x1fc   : > { %v1192_v27 = vmul.f32 %v1161_v54, %v950_v8  ;;  %v1177_v8 = vrot.slane %v1145_v18, %v3432_v24 }
 0x1fd   : > { %v955_v28 = vpop.f32.mrb[16].mxu0 }
 0x1fe   : > { %v956_v29 = vadd.f32 %v955_v28, %v3462_v43  ;;  %v957_v32 = vpop.f32.mrb[17].mxu0  ;;  %2252 = vmatprep.mubr.f32.mxu1 %v1192_v27 }
 0x1ff   : > { %v3506_v0 = vadd.f32 %v957_v32, %v3427_v23 }
 0x200   : > { %v1193_v55 = vmul.f32 %v1161_v54, %v956_v29 }
 0x201   : > { %v961_v30 = vpop.f32.mrb[18].mxu0 }
 0x202   : > { %v962_v31 = vadd.f32 %v961_v30, %v3462_v43  ;;  %v963_v52 = vpop.f32.mrb[19].mxu0  ;;  %2253 = vmatmul.mubr.f32.gmra.mrb[10].mxu1 %v1193_v55 }
 0x203   : > { %v3511_v60 = vadd.f32 %v963_v52, %v3427_v23  ;;  %v1805_v52 = vld [vmem:[#allocation10 + $0x8] sm:$0xff] }
 0x204   : > { %v1194_v1 = vmul.f32 %v1165_v42, %v962_v31 }
 0x205   : > { %v967_v2 = vpop.f32.mrb[20].mxu0 }
 0x206   : > { %v968_v3 = vadd.f32 %v967_v2, %v3462_v43  ;;  %v969_v41 = vpop.f32.mrb[21].mxu0  ;;  %2255 = vmatprep.mubr.f32.mxu1 %v1194_v1 }
 0x207   : > { %v3516_v56 = vadd.f32 %v969_v41, %v3427_v23 }
 0x208   : > { %v1195_v44 = vmul.f32 %v1165_v42, %v968_v3  ;;  %v1804_v42 = vld [vmem:[#allocation10] sm:$0xff]  ;;  %v1806_v3 = vld [vmem:[#allocation10 + $0x10] sm:$0xff] }
 0x209   : > { %v973_v37 = vpop.f32.mrb[22].mxu0  ;;  %v2447_v53 = vpack.c.bf16 %v1805_v52, %v1804_v42 }
 0x20a   : > { %v974_v45 = vadd.f32 %v973_v37, %v3462_v43  ;;  %v975_v4 = vpop.f32.mrb[23].mxu0  ;;  %2256 = vmatmul.mubr.f32.gmra.mrb[12].mxu1 %v1195_v44  ;;  %v1809_v37 = vld [vmem:[#allocation10 + $0x28] sm:$0xff] }
 0x20b   : > { %v3521_v10 = vadd.f32 %v975_v4, %v3427_v23  ;;  %2448 = vmatpush3.bf16.msra.mxu0 %v2447_v53 }
 0x20c   : > { %v1196_v11 = vmul.f32 %v1169_v22, %v974_v45  ;;  %2449 = vmatprep.subr.bf16.mxu0 %v2876_v16 }
 0x20d   : > { %v979_v46 = vpop.f32.mrb[24].mxu0 }
 0x20e   : > { %v980_v47 = vadd.f32 %v979_v46, %v3462_v43  ;;  %v981_v12 = vpop.f32.mrb[25].mxu0  ;;  %2258 = vmatprep.mubr.f32.mxu1 %v1196_v11 }
 0x20f   : > { %v3525_v13 = vadd.f32 %v981_v12, %v3427_v23  ;;  %v1811_v12 = vld [vmem:[#allocation10 + $0x38] sm:$0xff] }
 0x210   : > { %v1197_v48 = vmul.f32 %v1169_v22, %v980_v47  ;;  %v1810_v47 = vld [vmem:[#allocation10 + $0x30] sm:$0xff] }
 0x211   : > { %v985_v50 = vpop.f32.mrb[26].mxu0 }
 0x212   : > { %v986_v51 = vadd.f32 %v985_v50, %v3462_v43  ;;  %v987_v57 = vpop.f32.mrb[27].mxu0  ;;  %2259 = vmatmul.mubr.f32.gmra.mrb[14].mxu1 %v1197_v48  ;;  %v2456_v50 = vpack.c.bf16 %v1811_v12, %v1810_v47 }
 0x213   : > { %v3530_v6 = vadd.f32 %v987_v57, %v3427_v23  ;;  %v1812_v57 = vld [vmem:[#allocation10 + $0x40] sm:$0xff] }
 0x214   : > { %v1198_v59 = vmul.f32 %v1173_v40, %v986_v51 }
 0x215   : > { %v991_v15 = vpop.f32.mrb[28].mxu0 }
 0x216   : > { %v992_v61 = vadd.f32 %v991_v15, %v3462_v43  ;;  %v993_v17 = vpop.f32.mrb[29].mxu0  ;;  %2261 = vmatprep.mubr.f32.mxu1 %v1198_v59  ;;  %v1813_v59 = vld [vmem:[#allocation10 + $0x48] sm:$0xff] }
 0x217   : > { %v3534_v62 = vadd.f32 %v993_v17, %v3427_v23  ;;  %v2459_v17 = vpack.c.bf16 %v1813_v59, %v1812_v57 }
 0x218   : > { %v1199_v19 = vmul.f32 %v1173_v40, %v992_v61 }
 0x219   : > { %v997_v7 = vpop.f32.mrb[30].mxu0 }
 0x21a   : > { %v998_v21 = vadd.f32 %v997_v7, %v3462_v43  ;;  %v999_v54 = vpop.f32.mrb[31].mxu0  ;;  %2262 = vmatmul.mubr.f32.gmra.mrb[16].mxu1 %v1199_v19 }
 0x21b   : > { %v3539_v25 = vadd.f32 %v999_v54, %v3427_v23  ;;  %v1815_v54 = vld [vmem:[#allocation10 + $0x58] sm:$0xff] }
 0x21c   : > { %v1200_v27 = vmul.f32 %v1177_v8, %v998_v21 }
 0x21d   : > { %v1003_v28 = vpop.f32.mrb[32].mxu0 }
 0x21e   : > { %v1004_v29 = vadd.f32 %v1003_v28, %v3462_v43  ;;  %v1005_v32 = vpop.f32.mrb[33].mxu0  ;;  %2264 = vmatprep.mubr.f32.mxu1 %v1200_v27  ;;  %v1807_v43 = vld [vmem:[#allocation10 + $0x18] sm:$0xff]  ;;  %v1816_v27 = vld [vmem:[#allocation10 + $0x60] sm:$0xff] }
 0x21f   : > { %v3543_v34 = vadd.f32 %v1005_v32, %v3427_v23  ;;  %v2450_v36 = vpack.c.bf16 %v1807_v43, %v1806_v3  ;;  %v1808_v23 = vld [vmem:[#allocation10 + $0x20] sm:$0xff] }
 0x220   : > { %v1201_v55 = vmul.f32 %v1177_v8, %v1004_v29  ;;  %v2453_v22 = vpack.c.bf16 %v1809_v37, %v1808_v23  ;;  %v1814_v8 = vld [vmem:[#allocation10 + $0x50] sm:$0xff] }
 0x221   : > { %2451 = vmatpush3.bf16.msra.mxu0 %v2450_v36  ;;  %v1818_v36 = vld [vmem:[#allocation10 + $0x70] sm:$0xff] }
 0x222   : > { %2265 = vmatmul.mubr.f32.gmra.mrb[18].mxu1 %v1201_v55  ;;  %2452 = vmatprep.subr.bf16.mxu0 %v2876_v16  ;;  %v2462_v55 = vpack.c.bf16 %v1815_v54, %v1814_v8 }
 0x225   : > { %2454 = vmatpush3.bf16.msra.mxu0 %v2453_v22 }
 0x226   : > { %2455 = vmatprep.subr.bf16.mxu0 %v2876_v16 }
 0x229   : > { %2457 = vmatpush3.bf16.msra.mxu0 %v2456_v50 }
 0x22a   : > { %2458 = vmatprep.subr.bf16.mxu0 %v2876_v16 }
 0x22d   : > { %2460 = vmatpush3.bf16.msra.mxu0 %v2459_v17 }
 0x22e   : > { %2461 = vmatprep.subr.bf16.mxu0 %v2876_v16 }
 0x231   : > { %2463 = vmatpush3.bf16.msra.mxu0 %v2462_v55 }
 0x232   : > { %2464 = vmatprep.subr.bf16.mxu0 %v2876_v16 }
 0x29b   : > { %v3545_v30 = vpop.f32.mrb[2].mxu1 }
 0x29c   : > { %v2210_v31 = vpop.f32.mrb[3].mxu1 }
 0x29d   : > { %v1817_v31 = vld [vmem:[#allocation10 + $0x68] sm:$0xff] }
 0x29e   : > { %v2465_v42 = vpack.c.bf16 %v1817_v31, %v1816_v27 }
 0x2a0   : > { %2466 = vmatpush3.bf16.msra.mxu0 %v2465_v42 }
 0x2a1   : > { %2467 = vmatprep.subr.bf16.mxu0 %v2876_v16  ;;  %v1405_v16 = vrot.slane %v3545_v30, 2 }
 0x2bd   : > { %v2245_v1 = vpop.f32.mrb[4].mxu1 }
 0x2be   : > { %v1268_v2 = vpop.f32.mrb[5].mxu1 }
 0x2bf   : > { %v1347_v41 = vmax.f32 %v1268_v2, %v2245_v1 }
 0x2c1   : > { %v1348_v44 = vrot.slane %v1347_v41, 4 }
 0x2c3   : > { %v1349_v45 = vmax.f32 %v1347_v41, %v1348_v44  ;;  %v1404_v41 = vrot.slane %v3545_v30, 1  ;;  %v1819_v44 = vld [vmem:[#allocation10 + $0x78] sm:$0xff] }
 0x2c5   : > { %v1350_v4 = vrot.slane %v1349_v45, 2  ;;  %v3549_v11 = vpop.f32.mrb[6].mxu1 }
 0x2c6   : > { %v3551_v46 = vpop.f32.mrb[7].mxu1 }
 0x2c7   : > { %v1351_v49 = vmax.f32 %v1349_v45, %v1350_v4  ;;  %v1354_v48 = vmax.f32 %v3551_v46, %v3549_v11 }
 0x2c9   : > { %v1352_v51 = vrot.slane %v1351_v49, 1  ;;  %v1355_v40 = vrot.slane %v1354_v48, 4 }
 0x2cb   : > { %v1353_v15 = vmax.f32 %v1351_v49, %v1352_v51  ;;  %v1356_v61 = vmax.f32 %v1354_v48, %v1355_v40 }
 0x2cd   : > { %v1419_v18 = vmax.f32 %v1353_v15, %v3545_v30  ;;  %v1357_v19 = vrot.slane %v1356_v61, 2  ;;  %v3558_v7 = vpop.f32.mrb[8].mxu1 }
 0x2ce   : > { %v3560_v21 = vpop.f32.mrb[9].mxu1 }
 0x2cf   : > { %v1456_v28 = vrot.slane %v1419_v18, %v3432_v24  ;;  %v1358_v29 = vmax.f32 %v1356_v61, %v1357_v19  ;;  %v1361_v32 = vmax.f32 %v3560_v21, %v3558_v7 }
 0x2d1   : > { %v1485_v52 = vsub.f32 %v1268_v2, %v1456_v28  ;;  %v1486_v53 = vsub.f32 %v2245_v1, %v1456_v28  ;;  %v1359_v3 = vrot.slane %v1358_v29, 1  ;;  %v1362_v43 = vrot.slane %v1361_v32, 4 }
 0x2d2   : > { %v2468_v1 = vpack.c.bf16 %v1819_v44, %v1818_v36 }
 0x2d3   : > { %v1501_v23 = vmul.f32 1.442695, %v1485_v52  ;;  %v1503_v37 = vmul.f32 1.442695, %v1486_v53  ;;  %v1360_v45 = vmax.f32 %v1358_v29, %v1359_v3  ;;  %v1363_v22 = vmax.f32 %v1361_v32, %v1362_v43 }
 0x2d4   : > { %2469 = vmatpush3.bf16.msra.mxu0 %v2468_v1 }
 0x2d5   : > { %2577 = vpow2.f32 %v1501_v23  ;;  %v1420_v4 = vmax.f32 %v1360_v45, %v1404_v41  ;;  %v1364_v47 = vrot.slane %v1363_v22, 2  ;;  %v3568_v12 = vpop.f32.mrb[10].mxu1 }
 0x2d6   : > { %2579 = vpow2.f32 %v1503_v37  ;;  %v3570_v2 = vpop.f32.mrb[11].mxu1 }
 0x2d7   : > { %v1435_v49 = vrot.slane %v1420_v4, 7  ;;  %v1460_v48 = vrot.slane %v1420_v4, %v3432_v24  ;;  %v1365_v50 = vmax.f32 %v1363_v22, %v1364_v47  ;;  %v1368_v51 = vmax.f32 %v3570_v2, %v3568_v12 }
 0x2d8   : > { %v1406_v22 = vrot.slane %v3545_v30, 3 }
 0x2d9   : > { %v1436_v40 = vsel %vm641_vm1, %v1435_v49, %v1419_v18  ;;  %v1487_v57 = vsub.f32 %v3551_v46, %v1460_v48  ;;  %v1488_v59 = vsub.f32 %v3549_v11, %v1460_v48  ;;  %v1366_v15 = vrot.slane %v1365_v50, 1 }
 0x2da   : > { %v1369_v61 = vrot.slane %v1368_v51, 4 }
 0x2db   : > { %v1505_v17 = vmul.f32 1.442695, %v1487_v57  ;;  %v1507_v19 = vmul.f32 1.442695, %v1488_v59  ;;  %v1367_v8 = vmax.f32 %v1365_v50, %v1366_v15 }
 0x2dc   : > { %v1370_v54 = vmax.f32 %v1368_v51, %v1369_v61 }
 0x2dd   : > { %2581 = vpow2.f32 %v1505_v17  ;;  %v1421_v27 = vmax.f32 %v1367_v8, %v1405_v16  ;;  %v3580_v28 = vpop.f32.mrb[12].mxu1 }
 0x2de   : > { %2583 = vpow2.f32 %v1507_v19  ;;  %v1371_v29 = vrot.slane %v1370_v54, 2  ;;  %v3582_v18 = vpop.f32.mrb[13].mxu1 }
 0x2df   : > { %v3584_v46 = vpop.eup %2577  ;;  %v1437_v11 = vrot.slane %v1421_v27, 6  ;;  %v1464_v32 = vrot.slane %v1421_v27, %v3432_v24  ;;  %v1375_v55 = vmax.f32 %v3582_v18, %v3580_v28 }
 0x2e0   : > { %v3589_v31 = vpop.eup %2579  ;;  %v1372_v42 = vmax.f32 %v1370_v54, %v1371_v29  ;;  %v1407_v29 = vrot.slane %v3545_v30, 4 }
 0x2e1   : > { %v1533_v52 = vadd.f32 %v3589_v31, %v3584_v46  ;;  %v1438_v53 = vsel %vm644_vm2, %v1437_v11, %v1436_v40  ;;  %v1489_v3 = vsub.f32 %v3560_v21, %v1464_v32  ;;  %v1490_v43 = vsub.f32 %v3558_v7, %v1464_v32 }
 0x2e2   : > { %v1373_v41 = vrot.slane %v1372_v42, 1  ;;  %v1376_v36 = vrot.slane %v1375_v55, 4 }
 0x2e3   : > { %v1534_v44 = vrot.slane %v1533_v52, 4  ;;  %v1509_v23 = vmul.f32 1.442695, %v1489_v3  ;;  %v1511_v37 = vmul.f32 1.442695, %v1490_v43 }
 0x2e4   : > { %v1374_v45 = vmax.f32 %v1372_v42, %v1373_v41  ;;  %v1377_v4 = vmax.f32 %v1375_v55, %v1376_v36 }
 0x2e5   : > { %v1535_v47 = vadd.f32 %v1534_v44, %v1533_v52  ;;  %2585 = vpow2.f32 %v1509_v23  ;;  %v3597_v1 = vpop.f32.mrb[14].mxu1 }
 0x2e6   : > { %2587 = vpow2.f32 %v1511_v37  ;;  %v1422_v49 = vmax.f32 %v1374_v45, %v1406_v22  ;;  %v1378_v48 = vrot.slane %v1377_v4, 2  ;;  %v3599_v50 = vpop.f32.mrb[15].mxu1 }
 0x2e7   : > { %v3601_v21 = vpop.eup %2581  ;;  %v1382_v7 = vmax.f32 %v3599_v50, %v3597_v1  ;;  %v1536_v40 = vrot.slane %v1535_v47, 2 }
 0x2e8   : > { %v3605_v51 = vpop.eup %2583  ;;  %v1439_v57 = vrot.slane %v1422_v49, 5  ;;  %v1468_v59 = vrot.slane %v1422_v49, %v3432_v24  ;;  %v1379_v15 = vmax.f32 %v1377_v4, %v1378_v48 }
 0x2e9   : > { %v1540_v61 = vadd.f32 %v3605_v51, %v3601_v21  ;;  %v1383_v17 = vrot.slane %v1382_v7, 4  ;;  %v1537_v32 = vadd.f32 %v1536_v40, %v1535_v47 }
 0x2ea   : > { %v1440_v19 = vsel %vm647_vm3, %v1439_v57, %v1438_v53  ;;  %v1491_v8 = vsub.f32 %v3570_v2, %v1468_v59  ;;  %v1492_v16 = vsub.f32 %v3568_v12, %v1468_v59  ;;  %v1380_v54 = vrot.slane %v1379_v15, 1 }
 0x2eb   : > { %v1541_v27 = vrot.slane %v1540_v61, 4  ;;  %v1384_v11 = vmax.f32 %v1382_v7, %v1383_v17  ;;  %v1538_v45 = vrot.slane %v1537_v32, 1 }
 0x2ec   : > { %v1513_v55 = vmul.f32 1.442695, %v1491_v8  ;;  %v1515_v42 = vmul.f32 1.442695, %v1492_v16  ;;  %v1381_v52 = vmax.f32 %v1379_v15, %v1380_v54  ;;  %v1408_v15 = vrot.slane %v3545_v30, 5 }
 0x2ed   : > { %v1542_v3 = vadd.f32 %v1541_v27, %v1540_v61  ;;  %v1385_v43 = vrot.slane %v1384_v11, 2  ;;  %v3614_v41 = vpop.f32.mrb[16].mxu1  ;;  %v1539_v54 = vadd.f32 %v1538_v45, %v1537_v32 }
 0x2ee   : > { %2589 = vpow2.f32 %v1513_v55  ;;  %v1423_v36 = vmax.f32 %v1381_v52, %v1407_v29  ;;  %v3616_v53 = vpop.f32.mrb[17].mxu1 }
 0x2ef   : > { %v3618_v2 = vpop.eup %2585  ;;  %v1543_v12 = vrot.slane %v1542_v3, 2  ;;  %2591 = vpow2.f32 %v1515_v42  ;;  %v1386_v44 = vmax.f32 %v1384_v11, %v1385_v43  ;;  %v1389_v23 = vmax.f32 %v3616_v53, %v3614_v41 }
 0x2f0   : > { %v3622_v37 = vpop.eup %2587  ;;  %v1441_v22 = vrot.slane %v1423_v36, 4  ;;  %v1472_v4 = vrot.slane %v1423_v36, %v3432_v24 }
 0x2f1   : > { %v1544_v47 = vadd.f32 %v1543_v12, %v1542_v3  ;;  %v1547_v49 = vadd.f32 %v3622_v37, %v3618_v2  ;;  %v1387_v48 = vrot.slane %v1386_v44, 1  ;;  %v1390_v7 = vrot.slane %v1389_v23, 4 }
 0x2f2   : > { %v1442_v40 = vsel %vm650_vm4, %v1441_v22, %v1440_v19  ;;  %v1493_v57 = vsub.f32 %v3582_v18, %v1472_v4  ;;  %v1494_v59 = vsub.f32 %v3580_v28, %v1472_v4 }
 0x2f3   : > { %v1545_v61 = vrot.slane %v1544_v47, 1  ;;  %v1548_v17 = vrot.slane %v1547_v49, 4  ;;  %v1388_v8 = vmax.f32 %v1386_v44, %v1387_v48  ;;  %v1391_v16 = vmax.f32 %v1389_v23, %v1390_v7 }
 0x2f4   : > { %v1517_v27 = vmul.f32 1.442695, %v1493_v57  ;;  %v1519_v29 = vmul.f32 1.442695, %v1494_v59  ;;  %v1409_v57 = vrot.slane %v3545_v30, 6 }
 0x2f5   : > { %v1546_v11 = vadd.f32 %v1545_v61, %v1544_v47  ;;  %v1549_v55 = vadd.f32 %v1548_v17, %v1547_v49  ;;  %v1424_v42 = vmax.f32 %v1388_v8, %v1408_v15  ;;  %v1392_v52 = vrot.slane %v1391_v16, 2  ;;  %v3631_v3 = vpop.f32.mrb[18].mxu1 }
 0x2f6   : > { %2593 = vpow2.f32 %v1517_v27  ;;  %v3633_v19 = vpop.f32.mrb[19].mxu1 }
 0x2f7   : > { %v1597_v28 = vsel %vm641_vm1, %v1546_v11, %v1539_v54  ;;  %v1550_v18 = vrot.slane %v1549_v55, 2  ;;  %2595 = vpow2.f32 %v1519_v29  ;;  %v1443_v43 = vrot.slane %v1424_v42, 3 }
 0x2f8   : > { %v3636_v36 = vpop.eup %2589  ;;  %v1476_v32 = vrot.slane %v1424_v42, %v3432_v24  ;;  %v1393_v12 = vmax.f32 %v1391_v16, %v1392_v52  ;;  %v1396_v44 = vmax.f32 %v3633_v19, %v3631_v3 }
 0x2f9   : > { %v3641_v23 = vpop.eup %2591  ;;  %v1551_v45 = vadd.f32 %v1550_v18, %v1549_v55  ;;  %v1444_v22 = vsel %vm653_vm5, %v1443_v43, %v1442_v40 }
 0x2fa   : > { %v1554_v4 = vadd.f32 %v3641_v23, %v3636_v36  ;;  %v1495_v47 = vsub.f32 %v3599_v50, %v1476_v32  ;;  %v1496_v49 = vsub.f32 %v3597_v1, %v1476_v32  ;;  %v1394_v48 = vrot.slane %v1393_v12, 1 }
 0x2fb   : > { %v1552_v7 = vrot.slane %v1551_v45, 1  ;;  %v1397_v59 = vrot.slane %v1396_v44, 4 }
 0x2fc   : > { %v1555_v15 = vrot.slane %v1554_v4, 4  ;;  %v1521_v61 = vmul.f32 1.442695, %v1495_v47  ;;  %v1523_v17 = vmul.f32 1.442695, %v1496_v49  ;;  %v1395_v8 = vmax.f32 %v1393_v12, %v1394_v48 }
 0x2fd   : > { %v1553_v16 = vadd.f32 %v1552_v7, %v1551_v45  ;;  %v1398_v54 = vmax.f32 %v1396_v44, %v1397_v59 }
 0x2fe   : > { %v1556_v27 = vadd.f32 %v1555_v15, %v1554_v4  ;;  %2597 = vpow2.f32 %v1521_v61  ;;  %v1425_v40 = vmax.f32 %v1395_v8, %v1409_v57  ;;  %v1410_v57 = vrot.slane %v3545_v30, 7 }
 0x2ff   : > { %v1598_v29 = vsel %vm644_vm2, %v1553_v16, %v1597_v28  ;;  %2599 = vpow2.f32 %v1523_v17  ;;  %v1399_v50 = vrot.slane %v1398_v54, 2 }
 0x300   : > { %v3650_v11 = vpop.eup %2593  ;;  %v1557_v1 = vrot.slane %v1556_v27, 2  ;;  %v1445_v55 = vrot.slane %v1425_v40, 2  ;;  %v1480_v42 = vrot.slane %v1425_v40, %v3432_v24 }
 0x301   : > { %v3653_v52 = vpop.eup %2595  ;;  %v1400_v18 = vmax.f32 %v1398_v54, %v1399_v50 }
 0x302   : > { %v1558_v43 = vadd.f32 %v1557_v1, %v1556_v27  ;;  %v1561_v32 = vadd.f32 %v3653_v52, %v3650_v11  ;;  %v1446_v12 = vsel %vm656_vm6, %v1445_v55, %v1444_v22  ;;  %v1497_v44 = vsub.f32 %v3616_v53, %v1480_v42 }
 0x303   : > { %v1498_v28 = vsub.f32 %v3614_v41, %v1480_v42  ;;  %v1401_v45 = vrot.slane %v1400_v18, 1 }
 0x304   : > { %v1559_v4 = vrot.slane %v1558_v43, 1  ;;  %v1562_v47 = vrot.slane %v1561_v32, 4  ;;  %v1525_v49 = vmul.f32 1.442695, %v1497_v44 }
 0x305   : > { %v1527_v48 = vmul.f32 1.442695, %v1498_v28  ;;  %v1402_v7 = vmax.f32 %v1400_v18, %v1401_v45 }
 0x306   : > { %v1560_v59 = vadd.f32 %v1559_v4, %v1558_v43  ;;  %v1563_v15 = vadd.f32 %v1562_v47, %v1561_v32  ;;  %2601 = vpow2.f32 %v1525_v49 }
 0x307   : > { %2603 = vpow2.f32 %v1527_v48  ;;  %v1426_v61 = vmax.f32 %v1402_v7, %v1410_v57 }
 0x308   : > { %v3661_v17 = vpop.eup %2597  ;;  %v1599_v22 = vsel %vm647_vm3, %v1560_v59, %v1598_v29  ;;  %v1564_v53 = vrot.slane %v1563_v15, 2 }
 0x309   : > { %v3664_v8 = vpop.eup %2599  ;;  %v1447_v41 = vrot.slane %v1426_v61, 1  ;;  %v1484_v16 = vrot.slane %v1426_v61, %v3432_v24 }
 0x30a   : > { %v1565_v54 = vadd.f32 %v1564_v53, %v1563_v15  ;;  %v1568_v27 = vadd.f32 %v3664_v8, %v3661_v17 }
 0x30b   : > { %v1448_v40 = vsel %vm659_vm7, %v1447_v41, %v1446_v12  ;;  %v1499_v50 = vsub.f32 %v3633_v19, %v1484_v16  ;;  %v1500_v1 = vsub.f32 %v3631_v3, %v1484_v16 }
 0x30c   : > { %v1566_v55 = vrot.slane %v1565_v54, 1  ;;  %v1569_v42 = vrot.slane %v1568_v27, 4  ;;  %v1450_v29 = vsub.f32 %v3545_v30, %v1448_v40 }
 0x30d   : > { %v1529_v18 = vmul.f32 1.442695, %v1499_v50  ;;  %v1531_v43 = vmul.f32 1.442695, %v1500_v1 }
 0x30e   : > { %v1567_v32 = vadd.f32 %v1566_v55, %v1565_v54  ;;  %v1570_v44 = vadd.f32 %v1569_v42, %v1568_v27 }
 0x30f   : > { %2605 = vpow2.f32 %v1529_v18 }
 0x310   : > { %v3673_v28 = vpop.eup %2601  ;;  %v1600_v45 = vsel %vm650_vm4, %v1567_v32, %v1599_v22  ;;  %v1571_v4 = vrot.slane %v1570_v44, 2  ;;  %2607 = vpow2.f32 %v1531_v43  ;;  %v1451_v22 = vmul.f32 1.442695, %v1450_v29 }
 0x311   : > { %v3676_v47 = vpop.eup %2603 }
 0x312   : > { %v1572_v19 = vadd.f32 %v1571_v4, %v1570_v44  ;;  %v1575_v3 = vadd.f32 %v3676_v47, %v3673_v28  ;;  %2609 = vpow2.f32 %v1451_v22  ;;  %v627_v44 = vsub.s32 2, %v3417_v20 }
 0x314   : > { %v1573_v12 = vrot.slane %v1572_v19, 1  ;;  %v1576_v49 = vrot.slane %v1575_v3, 4  ;;  %v628_v29 = vrot.slane %v3437_v9, %v627_v44 }
 0x316   : > { %v1574_v30 = vadd.f32 %v1573_v12, %v1572_v19  ;;  %v1577_v48 = vadd.f32 %v1576_v49, %v1575_v3  ;;  %v800_v4 = vadd.f32 %v3472_v38, %v628_v29 }
 0x318   : > { %v1601_v7 = vsel %vm653_vm5, %v1574_v30, %v1600_v45  ;;  %v1578_v57 = vrot.slane %v1577_v48, 2 }
 0x319   : > { %v2606_v59 = vpop.eup %2605 }
 0x31a   : > { %v1579_v15 = vadd.f32 %v1578_v57, %v1577_v48  ;;  %v2608_v61 = vpop.eup %2607 }
 0x31b   : > { %v1582_v41 = vadd.f32 %v2608_v61, %v2606_v59 }
 0x31c   : > { %v1580_v53 = vrot.slane %v1579_v15, 1  ;;  %v2610_v18 = vpop.eup %2609 }
 0x31d   : > { %v1583_v54 = vrot.slane %v1582_v41, 4 }
 0x31e   : > { %v1581_v16 = vadd.f32 %v1580_v53, %v1579_v15 }
 0x31f   : > { %v1584_v40 = vadd.f32 %v1583_v54, %v1582_v41 }
 0x320   : > { %v1602_v27 = vsel %vm656_vm6, %v1581_v16, %v1601_v7 }
 0x321   : > { %v1585_v50 = vrot.slane %v1584_v40, 2 }
 0x323   : > { %v1586_v1 = vadd.f32 %v1585_v50, %v1584_v40 }
 0x325   : > { %v1587_v55 = vrot.slane %v1586_v1, 1 }
 0x327   : > { %v1588_v42 = vadd.f32 %v1587_v55, %v1586_v1 }
 0x329   : > { %v1603_v43 = vsel %vm659_vm7, %v1588_v42, %v1602_v27 }
 0x32a   : > { %v1605_v32 = vadd.f32 %v2610_v18, %v1603_v43 }
 0x32c   : > { %2611 = vrcp.f32 %v1605_v32 }
 0x336   : > { %v2612_v45 = vpop.eup %2611 }
 0x337   : > { %v1610_v19 = vcombine.high %v2612_v45, %v2612_v45  ;;  %v1607_v3 = vmul.f32 %v2612_v45, %v2610_v18  ;;  %v1617_v12 = vrot.slane %v2612_v45, %v3453_v33 }
 0x339   : > { %v1624_v49 = vrot.slane %v1610_v19, %v3453_v33  ;;  %v3688_v30 = vmul.f32 %v1607_v3, %v800_v4  ;;  %v1625_v48 = vcombine.high %v1617_v12, %v1617_v12  ;;  %v1633_v7 = vrot.slane %v1617_v12, %v3453_v33 }
 0x33b   : > { %v1626_v57 = vcombine.high %v1624_v49, %v1624_v49  ;;  %v1640_v15 = vrot.slane %v1624_v49, %v3453_v33  ;;  %v1647_v20 = vrot.slane %v1625_v48, %v3453_v33  ;;  %v1655_v9 = vcombine.high %v1633_v7, %v1633_v7 }
 0x33c   : > { %v1662_v53 = vrot.slane %v1633_v7, %v3432_v24 }
 0x33d   : > { %v1654_v38 = vrot.slane %v1626_v57, %v3453_v33  ;;  %v1656_v22 = vcombine.high %v1640_v15, %v1640_v15  ;;  %v1678_v41 = vrot.slane %v1640_v15, %v3432_v24  ;;  %v1657_v16 = vcombine.high %v1647_v20, %v1647_v20 }
 0x33e   : > { %v1666_v54 = vrot.slane %v1647_v20, %v3432_v24  ;;  %v1670_v27 = vrot.slane %v1655_v9, %v3432_v24  ;;  %v1699_v40 = vmul.f32 %v3584_v46, %v1662_v53  ;;  %v1700_v50 = vmul.f32 %v3589_v31, %v1662_v53 }
 0x33f   : > { %v1658_v1 = vcombine.high %v1654_v38, %v1654_v38  ;;  %v1682_v55 = vrot.slane %v1654_v38, %v3432_v24  ;;  %v1686_v42 = vrot.slane %v1656_v22, %v3432_v24  ;;  %v1707_v18 = vmul.f32 %v3650_v11, %v1678_v41 }
 0x340   : > { %v1708_v33 = vmul.f32 %v3653_v52, %v1678_v41  ;;  %v1674_v43 = vrot.slane %v1657_v16, %v3432_v24  ;;  %v1701_v32 = vmul.f32 %v3601_v21, %v1666_v54  ;;  %v1702_v44 = vmul.f32 %v3605_v51, %v1666_v54 }
 0x341   : > { %v1690_v29 = vrot.slane %v1658_v1, %v3432_v24  ;;  %v1709_v46 = vmul.f32 %v3661_v17, %v1682_v55  ;;  %v1710_v31 = vmul.f32 %v3664_v8, %v1682_v55  ;;  %v1723_v45 = vmul.f32 %v1707_v18, %v3511_v60 }
 0x342   : > { %v1724_v4 = vmul.f32 %v1708_v33, %v3516_v56  ;;  %v1703_v11 = vmul.f32 %v3618_v2, %v1670_v27  ;;  %v1704_v52 = vmul.f32 %v3622_v37, %v1670_v27  ;;  %v1705_v19 = vmul.f32 %v3636_v36, %v1674_v43 }
 0x343   : > { %v1713_v3 = vmul.f32 %v2606_v59, %v1690_v29  ;;  %v1714_v21 = vmul.f32 %v2608_v61, %v1690_v29  ;;  %v1725_v51 = vmul.f32 %v1709_v46, %v3521_v10  ;;  %v1726_v24 = vmul.f32 %v1710_v31, %v3525_v13 }
 0x344   : > { %v1706_v17 = vmul.f32 %v3641_v23, %v1674_v43  ;;  %v1711_v8 = vmul.f32 %v3673_v28, %v1686_v42  ;;  %v1712_v60 = vmul.f32 %v3676_v47, %v1686_v42  ;;  %v1715_v56 = vmul.f32 %v1699_v40, %v3468_v35 }
 0x345   : > { %v1729_v2 = vmul.f32 %v1713_v3, %v3539_v25  ;;  %v1730_v37 = vmul.f32 %v1714_v21, %v3543_v34  ;;  %v1766_v12 = vadd.f32 %v1726_v24, %v1725_v51  ;;  %v1716_v36 = vmul.f32 %v1700_v50, %v3475_v5 }
 0x346   : > { %v1717_v59 = vmul.f32 %v1701_v32, %v3480_v14  ;;  %v1718_v10 = vmul.f32 %v1702_v44, %v3484_v39  ;;  %v1719_v13 = vmul.f32 %v1703_v11, %v3489_v58  ;;  %v1720_v23 = vmul.f32 %v1704_v52, %v3495_v63 }
 0x347   : > { %v1780_v28 = vadd.f32 %v1730_v37, %v1729_v2  ;;  %v1721_v47 = vmul.f32 %v1705_v19, %v3501_v26  ;;  %v1722_v35 = vmul.f32 %v1706_v17, %v3506_v0  ;;  %v1727_v25 = vmul.f32 %v1711_v8, %v3530_v6 }
 0x348   : > { %v1728_v34 = vmul.f32 %v1712_v60, %v3534_v62  ;;  %v1731_v61 = vadd.f32 %v1716_v36, %v1715_v56  ;;  %v1738_v49 = vadd.f32 %v1718_v10, %v1717_v59  ;;  %v1745_v5 = vadd.f32 %v1720_v23, %v1719_v13 }
 0x349   : > { %v1781_v48 = vrot.slane %v1780_v28, 4  ;;  %v1752_v14 = vadd.f32 %v1722_v35, %v1721_v47  ;;  %v1759_v7 = vadd.f32 %v1724_v4, %v1723_v45  ;;  %v1767_v39 = vrot.slane %v1766_v12, 4 }
 0x34a   : > { %v1732_v57 = vrot.slane %v1731_v61, 4  ;;  %v1739_v58 = vrot.slane %v1738_v49, 4  ;;  %v1746_v15 = vrot.slane %v1745_v5, 4  ;;  %v1773_v63 = vadd.f32 %v1728_v34, %v1727_v25  ;;  %v2051_v34 = vld [vmem:[%s3834_s30] ss:$0 sm:$0xff] }
 0x34b   : > { %v1782_v20 = vadd.f32 %v1781_v48, %v1780_v28  ;;  %v1753_v9 = vrot.slane %v1752_v14, 4  ;;  %v1760_v26 = vrot.slane %v1759_v7, 4  ;;  %v1768_v53 = vadd.f32 %v1767_v39, %v1766_v12 }
 0x34c   : > { %v1733_v0 = vadd.f32 %v1732_v57, %v1731_v61  ;;  %v1740_v38 = vadd.f32 %v1739_v58, %v1738_v49  ;;  %v1747_v6 = vadd.f32 %v1746_v15, %v1745_v5  ;;  %v1774_v22 = vrot.slane %v1773_v63, 4 }
 0x34d   : > { %v1783_v62 = vrot.slane %v1782_v20, 2  ;;  %v1754_v41 = vadd.f32 %v1753_v9, %v1752_v14  ;;  %v1761_v16 = vadd.f32 %v1760_v26, %v1759_v7  ;;  %v1769_v54 = vrot.slane %v1768_v53, 2 }
 0x34e   : > { %v1734_v27 = vrot.slane %v1733_v0, 2  ;;  %v1741_v40 = vrot.slane %v1740_v38, 2  ;;  %v1748_v50 = vrot.slane %v1747_v6, 2  ;;  %v1775_v1 = vadd.f32 %v1774_v22, %v1773_v63 }
 0x34f   : > { %v1755_v55 = vrot.slane %v1754_v41, 2  ;;  %v1762_v42 = vrot.slane %v1761_v16, 2  ;;  %v1770_v18 = vadd.f32 %v1769_v54, %v1768_v53  ;;  %v1784_v31 = vadd.f32 %v1783_v62, %v1782_v20 }
 0x350   : > { %v1735_v33 = vadd.f32 %v1734_v27, %v1733_v0  ;;  %v1742_v43 = vadd.f32 %v1741_v40, %v1740_v38  ;;  %v1749_v32 = vadd.f32 %v1748_v50, %v1747_v6  ;;  %v1776_v44 = vrot.slane %v1775_v1, 2 }
 0x351   : > { %v1756_v29 = vadd.f32 %v1755_v55, %v1754_v41  ;;  %v1763_v46 = vadd.f32 %v1762_v42, %v1761_v16  ;;  %v1771_v17 = vrot.slane %v1770_v18, 1  ;;  %v1785_v56 = vrot.slane %v1784_v31, 1 }
 0x352   : > { %v1736_v45 = vrot.slane %v1735_v33, 1  ;;  %v1743_v4 = vrot.slane %v1742_v43, 1  ;;  %v1750_v11 = vrot.slane %v1749_v32, 1  ;;  %v1777_v52 = vadd.f32 %v1776_v44, %v1775_v1 }
 0x353   : > { %v1757_v19 = vrot.slane %v1756_v29, 1  ;;  %v1764_v3 = vrot.slane %v1763_v46, 1  ;;  %v1772_v36 = vadd.f32 %v1771_v17, %v1770_v18  ;;  %v1786_v23 = vadd.f32 %v1785_v56, %v1784_v31 }
 0x354   : > { %v1737_v21 = vadd.f32 %v1736_v45, %v1735_v33  ;;  %v1744_v51 = vadd.f32 %v1743_v4, %v1742_v43  ;;  %v1751_v24 = vadd.f32 %v1750_v11, %v1749_v32  ;;  %v1778_v60 = vrot.slane %v1777_v52, 1 }
 0x355   : > { %v1758_v8 = vadd.f32 %v1757_v19, %v1756_v29  ;;  %v1765_v37 = vadd.f32 %v1764_v3, %v1763_v46 }
 0x356   : > { %v1795_v2 = vsel %vm641_vm1, %v1744_v51, %v1737_v21  ;;  %v1779_v10 = vadd.f32 %v1778_v60, %v1777_v52 }
 0x357   : > { %v1796_v12 = vsel %vm644_vm2, %v1751_v24, %v1795_v2 }
 0x358   : > { %v1797_v59 = vsel %vm647_vm3, %v1758_v8, %v1796_v12 }
 0x359   : > { %v1798_v13 = vsel %vm650_vm4, %v1765_v37, %v1797_v59 }
 0x35a   : > { %v1799_v28 = vsel %vm653_vm5, %v1772_v36, %v1798_v13 }
 0x35b   : > { %v1800_v47 = vsel %vm656_vm6, %v1779_v10, %v1799_v28 }
 0x35c   : > { %v1801_v35 = vsel %vm659_vm7, %v1786_v23, %v1800_v47 }
 0x35d   : > { %v1803_v25 = vadd.f32 %v1801_v35, %v3688_v30 }
 0x35f   : > { %2300 = vmatmul.mubr.f32.vlgmr.msra.gmra.mrb[34].mxu0 %v1803_v25 }
 0x432   : > { %v1893_v61 = vpop.f32.mrb[34].mxu0 }
 0x433   : > { %v1894_v49 = vadd.f32 %v2051_v34, %v1893_v61  ;;  %v2301_v5 = vpop.f32.mrb[35].mxu0 }
 0x435   : > { %1897 = vst [vmem:[%s451_s17] sm:$0xff] %v1894_v49 }
 0x436   : > { %2796 = shalt.err (!%p2793_p8)
}
 0x437   : > { %s2797_s2 = scalar_lea.hbm %s3748_s22, 128  ;;  %s2801_s30 = scalar_lea.hbm %s3835_s26, 256 }
 0x438   : > { %p2798_p6 = scmp.ne.s32.totalorder %s3748_s22, %s2797_s2  ;;  %p2802_p3 = scmp.lt.u32.totalorder %s3748_s22, %s3835_s26 }
 0x439   : > { %p2803_p0 = scmp.lt.u32.totalorder %s2801_s30, %s2797_s2  ;;  %p2805_p2 = scmp.lt.u32.totalorder %s2797_s2, %s3748_s22 }
 0x43a   : > { %p2799_p9 = pnand %p2798_p6, %p3836_p7 }
 0x43b   : > { %p2804_p5 = por %p2803_p0, %p2802_p3 }
 0x43c   : > { %p2800_p4 = pneg %p2799_p9 }
 0x43d   : > { %p2806_p10 = por %p2805_p2, %p2804_p5 }
 0x43f   : > { %p2807_p1 = pnand %p2806_p10, %p2800_p4 }
 0x441   : > { %2810 = shalt.err (!%p2807_p1)
}
 0x442   : > { %2492 = dma.vmem_to_hbm [thread:$0]  (%p3836_p7), %s3750_s29, 128, %s3748_s22, %s1899_s27  }
 0x443 PF: > { %s1924_s24 = sand.u32 1, %s2849_s13   ;;  %p3837_p11 = scmp.ne.s32.totalorder %s3825_s8, 0 }
 0x444   : > { %p3838_p12 = scmp.ge.s32.totalorder %s2861_s16, 2  ;;  %s1925_s20 = scalar_lea.sflag [#allocation4], %s1924_s24 }
 0x446   : > { %p2515_p13 = pnand %p3838_p12, %p3837_p11 }
 0x448   : > { %2844 = dma.done.wait (!%p2515_p13), %s1925_s20, 128  }
 0x449   : > { %2846 = vsyncadd (!%p2515_p13), %s1925_s20, 4294967168  ;;  %p26_p8 = scmp.ge.s32.totalorder %s3098_s11, 4   ;;  %s3839_s13 = smov %s2853_s14 }
 0x44a   : > { %s3840_s14 = smov %s2857_s15  ;;  %s3841_s15 = smov %s3110_s4 }
 0x44b   : > { %s3842_s16 = smov %s3098_s11  ;;  %28 = sbr.rel (!%p26_p8) target bundleno = 13 (0xd), region = 125 }
 0x452   :  { %1930 = vsyncpa [#allocation3], 1 }
 0x453   :  { %1932 = vsyncpa [#allocation3 + $0x1], 1 }
 0x454   :  { %1933 = vsyncpa [#allocation6], 1 }
 0x455   :  { %1934 = vsyncpa [#allocation9], 1 }
 0x456   :  { %1935 = vsyncpa [#allocation12], 1 }
 0x457   :  { %1936 = vsyncpa [#allocation4], 1 }
 0x458   :  { %1938 = vsyncpa [#allocation4 + $0x1], 1 }

</bundles_post_ra>
